<compile_context>
chip_gen: v5e
topology: v5e:2x2
jax: 0.10.0
libtpu: 0.0.40
codegen_flags: <defaults>
</compile_context>

<pallas_src>
import jax
import jax.numpy as jnp
import numpy as np
from jax import lax
from jax.experimental import pallas as pl
from jax.experimental.pallas import tpu as pltpu


def _make_kernel(margin: float, tn: int):
    def kernel(xr_ref, xc_ref, sqr_ref, lr_ref, sqc_ref, lc_ref,
               out_ref, hp_acc, hn_acc):
        j = pl.program_id(1)

        @pl.when(j == 0)
        def _init():
            hp_acc[...] = jnp.full(hp_acc.shape, -jnp.inf, hp_acc.dtype)
            hn_acc[...] = jnp.full(hn_acc.shape, jnp.inf, hn_acc.dtype)

        # (-2 x_i) . x_j on the MXU (f32 accumulation); the -2 was folded into the
        # row operand in the wrapper, so no O(tm*tn) scale here.
        gram2 = lax.dot_general(
            xr_ref[...], xc_ref[...],
            dimension_numbers=(((1,), (1,)), ((), ())),
            preferred_element_type=jnp.float32)                  # (tm, tn)

        # Column sidecars are resident (1, N_pad) slabs; slice the current tile.
        col0 = pl.multiple_of(j * tn, tn)
        sqc = sqc_ref[:, pl.ds(col0, tn)]                        # (1, tn) f32, +inf on pads
        lc = lc_ref[:, pl.ds(col0, tn)]                          # (1, tn) i32, -1 on pads

        # Squared pairwise distances; eps clamp deferred to the accumulators.
        d2 = sqr_ref[...] + sqc + gram2                          # (tm, tn)

        same = lr_ref[...] == lc                                 # (tm,1)==(1,tn) -> (tm,tn)
        pos = jnp.where(same, d2, -jnp.inf)
        neg = jnp.where(same, jnp.inf, d2)

        # Online batch-hard mining across column tiles.
        hp_acc[...] = jnp.maximum(hp_acc[...], jnp.max(pos, axis=1, keepdims=True))
        hn_acc[...] = jnp.minimum(hn_acc[...], jnp.min(neg, axis=1, keepdims=True))

        @pl.when(j == pl.num_programs(1) - 1)
        def _finish():
            # Clamp commutes with max/min, so clamping the (tm,1) accumulators is
            # equivalent to clamping every per-element d2 before mining.
            hard_p = jnp.sqrt(jnp.maximum(hp_acc[...], 1e-12))
            hard_n = jnp.sqrt(jnp.maximum(hn_acc[...], 1e-12))
            per = jnp.maximum(hard_p - hard_n + margin, 0.0)     # (tm, 1)
            out_ref[...] = jnp.transpose(per, (1, 0))            # lane-dense (1, tm)

    return kernel


def _round_up(x, m):
    return ((x + m - 1) // m) * m


def _choose_tile(N, D_pad, itemsize):
    """Largest tile in {512, 256, 128} whose double-buffered input panels plus f32
    tile intermediates fit a ~24 MiB VMEM budget (safe on v7x's 64 MiB physical VMEM
    as well as v5e/v6e's 128 MiB)."""
    budget = 24 * 1024 * 1024
    n_cap = max(128, _round_up(N, 128))          # don't pad the batch beyond this
    slabs = 6 * max(128, _round_up(N, 512)) * 4  # resident (1, N_pad) sidecars
    for t in (512, 256, 128):
        if t > n_cap:
            continue
        foot = 4 * t * D_pad * itemsize + 5 * t * t * 4 + slabs + (64 << 10)
        if foot <= budget:
            return t
    return 128


def triplet_loss(emb, label, margin: float, normalize_feature: bool = False,
                 use_bf16_matmul: bool = False):
    """emb: (N, D) float32/bf16, label: (N,) int -> scalar float32 loss."""
    emb = jnp.asarray(emb)
    label = jnp.asarray(label).astype(jnp.int32)
    if normalize_feature:
        nrm = jnp.linalg.norm(emb.astype(jnp.float32), axis=1, keepdims=True)
        emb = (emb.astype(jnp.float32) / jnp.maximum(nrm, 1e-12)).astype(emb.dtype)

    N, D = emb.shape
    mm_dtype = jnp.bfloat16 if use_bf16_matmul else emb.dtype
    itemsize = jnp.dtype(mm_dtype).itemsize

    D_pad = max(128, _round_up(D, 128))          # lane-dense contraction dim
    tile = _choose_tile(N, D_pad, itemsize)
    N_pad = _round_up(max(N, 128), tile)
    tn = tile
    tm = tile
    if N_pad // tm < 2 and tm >= 256:            # >= 2 row tiles for v7x megacore
        tm //= 2
    grid = (N_pad // tm, N_pad // tn)

    emb_p = jnp.pad(emb, ((0, N_pad - N), (0, D_pad - D)))
    # Column (streamed) operand; row operand with the -2 folded in (exact scale).
    xc = emb_p.astype(mm_dtype)
    xr = (emb_p * jnp.asarray(-2.0, emb_p.dtype)).astype(mm_dtype)

    # Labels shifted to be non-negative so the -1 pad sentinel can never match.
    label = label - jnp.min(label)
    lbl_p = jnp.pad(label, (0, N_pad - N), constant_values=-1)
    lbl_row = lbl_p.reshape(N_pad, 1)
    lbl_col = lbl_p.reshape(1, N_pad)

    # Row/column squared norms computed once (O(N*D)); padded columns carry +inf so
    # their d2 is +inf (never the hard positive of a valid row, never the hard
    # negative since +inf cannot be the min).
    sq = jnp.sum(emb_p.astype(jnp.float32) ** 2, axis=1)
    valid = jnp.arange(N_pad) < N
    sq_row = sq.reshape(N_pad, 1)
    sq_col = jnp.where(valid, sq, jnp.inf).reshape(1, N_pad)

    cost = pl.CostEstimate(
        flops=int(2 * N_pad * N_pad * D_pad + 6 * N_pad * N_pad),
        transcendentals=int(2 * N_pad),
        bytes_accessed=int(
            grid[0] * tm * D_pad * itemsize               # row panel: once per row tile
            + grid[0] * grid[1] * tn * D_pad * itemsize   # col panel: per grid step
            + N_pad * 8                                   # row sidecars
            + 3 * N_pad * 4                               # resident column slabs
            + N_pad * 4),                                 # output
    )

    per_sample = pl.pallas_call(
        _make_kernel(float(margin), tn),
        out_shape=jax.ShapeDtypeStruct((grid[0], tm), jnp.float32),
        grid_spec=pltpu.PrefetchScalarGridSpec(
            num_scalar_prefetch=0,
            grid=grid,
            in_specs=[
                pl.BlockSpec((tm, D_pad), lambda i, j: (i, 0)),   # -2*emb rows (resident over j)
                pl.BlockSpec((tn, D_pad), lambda i, j: (j, 0)),   # emb cols (streamed)
                pl.BlockSpec((tm, 1), lambda i, j: (i, 0)),       # row sq-norms
                pl.BlockSpec((tm, 1), lambda i, j: (i, 0)),       # row labels
                pl.BlockSpec((1, N_pad), lambda i, j: (0, 0)),    # col sq-norms (resident slab)
                pl.BlockSpec((1, N_pad), lambda i, j: (0, 0)),    # col labels (resident slab)
            ],
            out_specs=pl.BlockSpec((1, tm), lambda i, j: (i, 0)),
            scratch_shapes=[pltpu.VMEM((tm, 1), jnp.float32),     # hard_p^2 accumulator
                            pltpu.VMEM((tm, 1), jnp.float32)],    # hard_n^2 accumulator
        ),
        compiler_params=pltpu.CompilerParams(
            dimension_semantics=("parallel", "arbitrary"),
            vmem_limit_bytes=40 * 1024 * 1024),
        cost_estimate=cost,
    )(xr, xc, sq_row, lbl_row, sq_col, lbl_col)

    # Padded rows hold garbage (+inf); slice them off before the mean over true N.
    per = per_sample.reshape(N_pad)[:N]
    return jnp.sum(per) / jnp.float32(N)


def _reference_loss(emb, label, margin):
    # Plain-JAX reference mirroring the PyTorch module.
    x = emb.astype(jnp.float32)
    sq = jnp.sum(x * x, axis=1, keepdims=True)
    dist = jnp.sqrt(jnp.maximum(sq + sq.T - 2.0 * (x @ x.T), 1e-12))
    sim = (label[:, None] == label[None, :]).astype(jnp.float32)
    hard_p = jnp.max(dist - 9999999.0 * (1.0 - sim), axis=1)
    hard_n = jnp.min(dist + 9999999.0 * sim, axis=1)
    return jnp.mean(jnp.maximum(hard_p - hard_n + margin, 0.0))


if __name__ == "__main__":
    key = jax.random.PRNGKey(0)
    k1, k2, k3, k4 = jax.random.split(key, 4)
    margin = 0.3

    # Small case (single tile): N=8 embeddings of dim 32, 4 identity classes.
    emb = jax.random.normal(k1, (8, 32), dtype=jnp.float32)
    label = jax.random.randint(k2, (8,), 0, 4, dtype=jnp.int32)
    loss = jax.block_until_ready(triplet_loss(emb, label, margin))
    ref = jax.block_until_ready(_reference_loss(emb, label, margin))
    assert np.allclose(np.asarray(loss), np.asarray(ref), rtol=1e-5, atol=1e-5), (loss, ref)

    # Larger case exercising the tiled grid path with row/column padding.
    emb2 = jax.random.normal(k3, (300, 40), dtype=jnp.float32)
    label2 = jax.random.randint(k4, (300,), 0, 16, dtype=jnp.int32)
    loss2 = jax.block_until_ready(triplet_loss(emb2, label2, margin))
    ref2 = jax.block_until_ready(_reference_loss(emb2, label2, margin))
    assert np.allclose(np.asarray(loss2), np.asarray(ref2), rtol=1e-4, atol=1e-5), (loss2, ref2)

    print("KERNEL_OK")
</pallas_src>

<mosaic_0001>
module attributes {stable_mosaic.version = 11 : i64} {
  func.func @kernel(%arg0: i32, %arg1: i32, %arg2: memref<128x128xf32, #tpu.memory_space<vmem>>, %arg3: memref<128x128xf32, #tpu.memory_space<vmem>>, %arg4: memref<128x1xf32, #tpu.memory_space<vmem>>, %arg5: memref<128x1xi32, #tpu.memory_space<vmem>>, %arg6: memref<1x128xf32, #tpu.memory_space<vmem>>, %arg7: memref<1x128xi32, #tpu.memory_space<vmem>>, %arg8: memref<1x128xf32, #tpu.memory_space<vmem>>, %arg9: memref<128x1xf32, #tpu.memory_space<vmem>>, %arg10: memref<128x1xf32, #tpu.memory_space<vmem>>) attributes {dimension_semantics = [#tpu.dimension_semantics<parallel>, #tpu.dimension_semantics<arbitrary>], iteration_bounds = array<i64: 1, 1>, scalar_prefetch = 0 : i64, scratch_operands = 2 : i64, tpu.core_type = #tpu.core_type<tc>, window_params = [{transform_indices = @transform_0, window_bounds = array<i64: 128, 128>}, {transform_indices = @transform_1, window_bounds = array<i64: 128, 128>}, {transform_indices = @transform_2, window_bounds = array<i64: 128, 1>}, {transform_indices = @transform_3, window_bounds = array<i64: 128, 1>}, {pipeline_mode = #tpu.pipeline_mode<synchronous>, transform_indices = @transform_4, window_bounds = array<i64: 1, 128>}, {pipeline_mode = #tpu.pipeline_mode<synchronous>, transform_indices = @transform_5, window_bounds = array<i64: 1, 128>}, {transform_indices = @transform_6, window_bounds = array<i64: 1, 128>}]} {
    %c0_i32 = arith.constant 0 : i32
    %0 = arith.cmpi eq, %arg1, %c0_i32 : i32
    %1 = arith.extui %0 : i1 to i32
    %c0_i32_0 = arith.constant 0 : i32
    %2 = arith.cmpi ne, %1, %c0_i32_0 : i32
    scf.if %2 {
      %cst_24 = arith.constant 0xFF800000 : f32
      %38 = vector.broadcast %cst_24 : f32 to vector<128x1xf32>
      %c0_25 = arith.constant 0 : index
      %c0_26 = arith.constant 0 : index
      %39 = vector.load %arg9[%c0_25, %c0_26] : memref<128x1xf32, #tpu.memory_space<vmem>>, vector<128x1xf32>
      tpu.vector_store %arg9[%c0_25, %c0_26], %38 {strides = array<i32>} : memref<128x1xf32, #tpu.memory_space<vmem>>, vector<128x1xf32>,
      %cst_27 = arith.constant 0x7F800000 : f32
      %40 = vector.broadcast %cst_27 : f32 to vector<128x1xf32>
      %c0_28 = arith.constant 0 : index
      %c0_29 = arith.constant 0 : index
      %41 = vector.load %arg10[%c0_28, %c0_29] : memref<128x1xf32, #tpu.memory_space<vmem>>, vector<128x1xf32>
      tpu.vector_store %arg10[%c0_28, %c0_29], %40 {strides = array<i32>} : memref<128x1xf32, #tpu.memory_space<vmem>>, vector<128x1xf32>,
    } else {
    }
    %c0 = arith.constant 0 : index
    %c0_1 = arith.constant 0 : index
    %3 = vector.load %arg2[%c0, %c0_1] : memref<128x128xf32, #tpu.memory_space<vmem>>, vector<128x128xf32>
    %c0_2 = arith.constant 0 : index
    %c0_3 = arith.constant 0 : index
    %4 = vector.load %arg3[%c0_2, %c0_3] : memref<128x128xf32, #tpu.memory_space<vmem>>, vector<128x128xf32>
    %cst = arith.constant dense<0.000000e+00> : vector<128x128xf32>
    %5 = tpu.matmul %3, %4, %cst {dimension_numbers = #tpu.dot_dimension_numbers<[1], [1], [0], [0], [0, 0, 1, 0], [], []>} : vector<128x128xf32>, vector<128x128xf32>, vector<128x128xf32> -> vector<128x128xf32>
    %c128_i32 = arith.constant 128 : i32
    %6 = arith.muli %arg1, %c128_i32 : i32
    %7 = tpu.assume_multiple %6, 128 : i32
    %c0_4 = arith.constant 0 : index
    %8 = arith.index_cast %7 : i32 to index
    %9 = vector.load %arg6[%c0_4, %8] : memref<1x128xf32, #tpu.memory_space<vmem>>, vector<1x128xf32>
    %c0_5 = arith.constant 0 : index
    %10 = arith.index_cast %7 : i32 to index
    %11 = vector.load %arg7[%c0_5, %10] : memref<1x128xi32, #tpu.memory_space<vmem>>, vector<1x128xi32>
    %c0_6 = arith.constant 0 : index
    %c0_7 = arith.constant 0 : index
    %12 = vector.load %arg4[%c0_6, %c0_7] : memref<128x1xf32, #tpu.memory_space<vmem>>, vector<128x1xf32>
    %13 = vector.broadcast %12 : vector<128x1xf32> to vector<128x128xf32>
    %14 = vector.broadcast %9 : vector<1x128xf32> to vector<128x128xf32>
    %15 = arith.addf %13, %14 : vector<128x128xf32>
    %16 = arith.addf %15, %5 : vector<128x128xf32>
    %c0_8 = arith.constant 0 : index
    %c0_9 = arith.constant 0 : index
    %17 = vector.load %arg5[%c0_8, %c0_9] : memref<128x1xi32, #tpu.memory_space<vmem>>, vector<128x1xi32>
    %18 = vector.broadcast %17 : vector<128x1xi32> to vector<128x128xi32>
    %19 = vector.broadcast %11 : vector<1x128xi32> to vector<128x128xi32>
    %20 = arith.cmpi eq, %18, %19 : vector<128x128xi32>
    %cst_10 = arith.constant 0xFF800000 : f32
    %21 = vector.broadcast %cst_10 : f32 to vector<128x128xf32>
    %22 = arith.select %20, %16, %21 : vector<128x128xi1>, vector<128x128xf32>
    %cst_11 = arith.constant 0x7F800000 : f32
    %23 = vector.broadcast %cst_11 : f32 to vector<128x128xf32>
    %24 = arith.select %20, %23, %16 : vector<128x128xi1>, vector<128x128xf32>
    %c0_12 = arith.constant 0 : index
    %c0_13 = arith.constant 0 : index
    %25 = vector.load %arg9[%c0_12, %c0_13] : memref<128x1xf32, #tpu.memory_space<vmem>>, vector<128x1xf32>
    %cst_14 = arith.constant dense<0xFF800000> : vector<128xf32>
    %26 = vector.multi_reduction <maximumf>, %22, %cst_14 [1] : vector<128x128xf32> to vector<128xf32>
    %27 = vector.shape_cast %26 : vector<128xf32> to vector<128x1xf32>
    %28 = arith.maximumf %25, %27 : vector<128x1xf32>
    %c0_15 = arith.constant 0 : index
    %c0_16 = arith.constant 0 : index
    %29 = vector.load %arg9[%c0_15, %c0_16] : memref<128x1xf32, #tpu.memory_space<vmem>>, vector<128x1xf32>
    tpu.vector_store %arg9[%c0_15, %c0_16], %28 {strides = array<i32>} : memref<128x1xf32, #tpu.memory_space<vmem>>, vector<128x1xf32>,
    %c0_17 = arith.constant 0 : index
    %c0_18 = arith.constant 0 : index
    %30 = vector.load %arg10[%c0_17, %c0_18] : memref<128x1xf32, #tpu.memory_space<vmem>>, vector<128x1xf32>
    %cst_19 = arith.constant dense<0x7F800000> : vector<128xf32>
    %31 = vector.multi_reduction <minimumf>, %24, %cst_19 [1] : vector<128x128xf32> to vector<128xf32>
    %32 = vector.shape_cast %31 : vector<128xf32> to vector<128x1xf32>
    %33 = arith.minimumf %30, %32 : vector<128x1xf32>
    %c0_20 = arith.constant 0 : index
    %c0_21 = arith.constant 0 : index
    %34 = vector.load %arg10[%c0_20, %c0_21] : memref<128x1xf32, #tpu.memory_space<vmem>>, vector<128x1xf32>
    tpu.vector_store %arg10[%c0_20, %c0_21], %33 {strides = array<i32>} : memref<128x1xf32, #tpu.memory_space<vmem>>, vector<128x1xf32>,
    %c0_i32_22 = arith.constant 0 : i32
    %35 = arith.cmpi eq, %arg1, %c0_i32_22 : i32
    %36 = arith.extui %35 : i1 to i32
    %c0_i32_23 = arith.constant 0 : i32
    %37 = arith.cmpi ne, %36, %c0_i32_23 : i32
    scf.if %37 {
      %c0_24 = arith.constant 0 : index
      %c0_25 = arith.constant 0 : index
      %38 = vector.load %arg9[%c0_24, %c0_25] : memref<128x1xf32, #tpu.memory_space<vmem>>, vector<128x1xf32>
      %cst_26 = arith.constant 9.99999996E-13 : f32
      %39 = vector.broadcast %cst_26 : f32 to vector<128x1xf32>
      %40 = arith.maximumf %38, %39 : vector<128x1xf32>
      %41 = math.sqrt %40 : vector<128x1xf32>
      %c0_27 = arith.constant 0 : index
      %c0_28 = arith.constant 0 : index
      %42 = vector.load %arg10[%c0_27, %c0_28] : memref<128x1xf32, #tpu.memory_space<vmem>>, vector<128x1xf32>
      %cst_29 = arith.constant 9.99999996E-13 : f32
      %43 = vector.broadcast %cst_29 : f32 to vector<128x1xf32>
      %44 = arith.maximumf %42, %43 : vector<128x1xf32>
      %45 = math.sqrt %44 : vector<128x1xf32>
      %46 = arith.subf %41, %45 : vector<128x1xf32>
      %cst_30 = arith.constant 3.000000e-01 : f32
      %47 = vector.broadcast %cst_30 : f32 to vector<128x1xf32>
      %48 = arith.addf %46, %47 : vector<128x1xf32>
      %cst_31 = arith.constant 0.000000e+00 : f32
      %49 = vector.broadcast %cst_31 : f32 to vector<128x1xf32>
      %50 = arith.maximumf %48, %49 : vector<128x1xf32>
      %51 = tpu.transpose %50, [1, 0] : vector<128x1xf32> -> vector<1x128xf32>
      %c0_32 = arith.constant 0 : index
      %c0_33 = arith.constant 0 : index
      %52 = vector.load %arg8[%c0_32, %c0_33] : memref<1x128xf32, #tpu.memory_space<vmem>>, vector<1x128xf32>
      tpu.vector_store %arg8[%c0_32, %c0_33], %51 {strides = array<i32>} : memref<1x128xf32, #tpu.memory_space<vmem>>, vector<1x128xf32>,
    } else {
    }
    return
  }
  func.func @transform_0(%arg0: i32, %arg1: i32) -> (i32, i32) {
    %c0_i32 = arith.constant 0 : i32
    %c0_i32_0 = arith.constant 0 : i32
    return %arg0, %c0_i32 : i32, i32
  }
  func.func @transform_1(%arg0: i32, %arg1: i32) -> (i32, i32) {
    %c0_i32 = arith.constant 0 : i32
    %c0_i32_0 = arith.constant 0 : i32
    return %arg1, %c0_i32 : i32, i32
  }
  func.func @transform_2(%arg0: i32, %arg1: i32) -> (i32, i32) {
    %c0_i32 = arith.constant 0 : i32
    %c0_i32_0 = arith.constant 0 : i32
    return %arg0, %c0_i32 : i32, i32
  }
  func.func @transform_3(%arg0: i32, %arg1: i32) -> (i32, i32) {
    %c0_i32 = arith.constant 0 : i32
    %c0_i32_0 = arith.constant 0 : i32
    return %arg0, %c0_i32 : i32, i32
  }
  func.func @transform_4(%arg0: i32, %arg1: i32) -> (i32, i32) {
    %c0_i32 = arith.constant 0 : i32
    %c0_i32_0 = arith.constant 0 : i32
    %c0_i32_1 = arith.constant 0 : i32
    return %c0_i32, %c0_i32_0 : i32, i32
  }
  func.func @transform_5(%arg0: i32, %arg1: i32) -> (i32, i32) {
    %c0_i32 = arith.constant 0 : i32
    %c0_i32_0 = arith.constant 0 : i32
    %c0_i32_1 = arith.constant 0 : i32
    return %c0_i32, %c0_i32_0 : i32, i32
  }
  func.func @transform_6(%arg0: i32, %arg1: i32) -> (i32, i32) {
    %c0_i32 = arith.constant 0 : i32
    %c0_i32_0 = arith.constant 0 : i32
    return %arg0, %c0_i32 : i32, i32
  }
}

</mosaic_0001>

<bundles_post_ra>
// kernel: tpu_custom_call.1
= control target key start
LH: loop header
LB: loop body
LE: loop exit
PB: predicated region body
PF: predicated region fallthrough
CT: control target
= control target key end

     0   :  { %v1267_v1 = vmov 0   ;;  %s2097_s0 = inlined_call_operand.vmem [shape: f32[128,128], index: 0, kind: input, shape index: {}]   ;;  %s2098_s1 = inlined_call_operand.vmem [shape: f32[128,128], index: 1, kind: input, shape index: {}]   ;;  %s2099_s2 = inlined_call_operand.vmem [shape: f32[128,1], index: 2, kind: input, shape index: {}]   ;;  %s2100_s3 = inlined_call_operand.vmem [shape: s32[128,1], index: 3, kind: input, shape index: {}]   ;;  %s2101_s4 = inlined_call_operand.vmem [shape: f32[1,128], index: 4, kind: input, shape index: {}]   ;;  %s2102_s5 = inlined_call_operand.vmem [shape: s32[1,128], index: 5, kind: input, shape index: {}]   ;;  %s2103_s6 = inlined_call_operand.hbm [shape: f32[1,128], index: 6, kind: output, shape index: {}]  }
   0x1   :  { %v92_v0 = vld [vmem:[%s2098_s1 + $0x78] sm:$0xff]  ;;  %1174 = vset.pattern.permute.xlu2 %v1267_v1  ;;  %1173 = vset.pattern.permute.xlu1 %v1267_v1  ;;  %v169_v2 = vld [vmem:[%s2099_s2 + $0x20] sm:$0xff]  ;;  %v167_v3 = vld [vmem:[%s2099_s2 + $0x10] sm:$0xff] }
   0x2   :  { %1172 = vset.pattern.permute.xlu0 %v1267_v1  ;;  %93 = vmatpush.xpose.msra.mxu0 %v92_v0  ;;  %v165_v4 = vld [vmem:[%s2099_s2] sm:$0xff]  ;;  %v91_v5 = vld [vmem:[%s2098_s1 + $0x70] sm:$0xff]  ;;  %v90_v6 = vld [vmem:[%s2098_s1 + $0x68] sm:$0xff] }
   0x3   :  { %1120 = vmatpush.xpose.msra.mxu1 %v92_v0  ;;  %1121 = vmatpush.xpose.msra.mxu2 %v92_v0  ;;  %v170_v7 = vld [vmem:[%s2099_s2 + $0x28] sm:$0xff] }
   0x4   :  { %1122 = vmatpush.xpose.msra.mxu3 %v92_v0  ;;  %203 = vperm.xlu2 %1174, %v169_v2  }
   0x5   :  { %193 = vperm.xlu1 %1173, %v167_v3   ;;  %183 = vperm.xlu0 %1172, %v165_v4  }
   0x6   :  { %94 = vmatpush.xpose.msra.mxu0 %v91_v5 }
   0x7   :  { %1123 = vmatpush.xpose.msra.mxu1 %v91_v5  ;;  %1124 = vmatpush.xpose.msra.mxu2 %v91_v5 }
   0x8   :  { %1125 = vmatpush.xpose.msra.mxu3 %v91_v5 }
   0x9   :  { %11 = vsyncpa [#allocation5], 0  ;;  %v168_v8 = vld [vmem:[%s2099_s2 + $0x18] sm:$0xff]  ;;  %v166_v9 = vld [vmem:[%s2099_s2 + $0x8] sm:$0xff]  ;;  %s1109_s28 = sshll.u32 %s2103_s6, 4  ;;  %s1110_s28 = int_to_ptr.hbm [resolvable:$true] %s1109_s28 }
   0xa   :  { %95 = vmatpush.xpose.msra.mxu0 %v90_v6  ;;  %v89_v10 = vld [vmem:[%s2098_s1 + $0x60] sm:$0xff]  ;;  %v88_v11 = vld [vmem:[%s2098_s1 + $0x58] sm:$0xff]  ;;  %v171_v14 = vld [vmem:[%s2099_s2 + $0x30] sm:$0xff] }
   0xb   :  { %1126 = vmatpush.xpose.msra.mxu1 %v90_v6  ;;  %1127 = vmatpush.xpose.msra.mxu2 %v90_v6  ;;  %v173_v12 = vld [vmem:[%s2099_s2 + $0x40] sm:$0xff]  ;;  %v172_v13 = vld [vmem:[%s2099_s2 + $0x38] sm:$0xff]  ;;  %v87_v15 = vld [vmem:[%s2098_s1 + $0x50] sm:$0xff] }
   0xc   :  { %1128 = vmatpush.xpose.msra.mxu3 %v90_v6  ;;  %208 = vperm.xlu2 %1174, %v170_v7   ;;  %v86_v16 = vld [vmem:[%s2098_s1 + $0x48] sm:$0xff]  ;;  %v176_v17 = vld [vmem:[%s2099_s2 + $0x58] sm:$0xff]  ;;  %v175_v18 = vld [vmem:[%s2099_s2 + $0x50] sm:$0xff] }
   0xd   :  { %198 = vperm.xlu1 %1173, %v168_v8   ;;  %188 = vperm.xlu0 %1172, %v166_v9   ;;  %v174_v19 = vld [vmem:[%s2099_s2 + $0x48] sm:$0xff]  ;;  %v85_v20 = vld [vmem:[%s2098_s1 + $0x40] sm:$0xff]  ;;  %v84_v21 = vld [vmem:[%s2098_s1 + $0x38] sm:$0xff] }
   0xe   :  { %96 = vmatpush.xpose.msra.mxu0 %v89_v10  ;;  %v179_v22 = vld [vmem:[%s2099_s2 + $0x70] sm:$0xff]  ;;  %v178_v23 = vld [vmem:[%s2099_s2 + $0x68] sm:$0xff]  ;;  %v177_v24 = vld [vmem:[%s2099_s2 + $0x60] sm:$0xff] }
   0xf   :  { %1129 = vmatpush.xpose.msra.mxu1 %v89_v10  ;;  %1130 = vmatpush.xpose.msra.mxu2 %v89_v10  ;;  %v83_v25 = vld [vmem:[%s2098_s1 + $0x30] sm:$0xff]  ;;  %v82_v26 = vld [vmem:[%s2098_s1 + $0x28] sm:$0xff]  ;;  %v296_v28 = vld [vmem:[%s2100_s3] sm:$0xff] }
  0x10   :  { %1131 = vmatpush.xpose.msra.mxu3 %v89_v10  ;;  %v297_v27 = vld [vmem:[%s2100_s3 + $0x8] sm:$0xff]  ;;  %v180_v29 = vld [vmem:[%s2099_s2 + $0x78] sm:$0xff]  ;;  %v81_v30 = vld [vmem:[%s2098_s1 + $0x20] sm:$0xff] }
  0x11   :  { %v80_v31 = vld [vmem:[%s2098_s1 + $0x18] sm:$0xff]  ;;  %v300_v32 = vld [vmem:[%s2100_s3 + $0x20] sm:$0xff]  ;;  %v298_v34 = vld [vmem:[%s2100_s3 + $0x10] sm:$0xff] }
  0x12   :  { %97 = vmatpush.xpose.msra.mxu0 %v88_v11  ;;  %v299_v33 = vld [vmem:[%s2100_s3 + $0x18] sm:$0xff]  ;;  %v79_v35 = vld [vmem:[%s2098_s1 + $0x10] sm:$0xff]  ;;  %v78_v36 = vld [vmem:[%s2098_s1 + $0x8] sm:$0xff] }
  0x13   :  { %1132 = vmatpush.xpose.msra.mxu1 %v88_v11  ;;  %1133 = vmatpush.xpose.msra.mxu2 %v88_v11  ;;  %v303_v37 = vld [vmem:[%s2100_s3 + $0x38] sm:$0xff]  ;;  %v302_v38 = vld [vmem:[%s2100_s3 + $0x30] sm:$0xff]  ;;  %v301_v39 = vld [vmem:[%s2100_s3 + $0x28] sm:$0xff] }
  0x14   :  { %1134 = vmatpush.xpose.msra.mxu3 %v88_v11  ;;  %223 = vperm.xlu2 %1174, %v173_v12   ;;  %v77_v40 = vld [vmem:[%s2098_s1] sm:$0xff]  ;;  %v306_v45 = vld [vmem:[%s2100_s3 + $0x50] sm:$0xff]  ;;  %v305_v46 = vld [vmem:[%s2100_s3 + $0x48] sm:$0xff] }
  0x15   :  { %218 = vperm.xlu1 %1173, %v172_v13   ;;  %213 = vperm.xlu0 %1172, %v171_v14   ;;  %v61_v41 = vld [vmem:[%s2097_s0] sm:$0xff]  ;;  %v62_v48 = vld [vmem:[%s2097_s0 + $0x8] sm:$0xff]  ;;  %v307_v54 = vld [vmem:[%s2100_s3 + $0x58] sm:$0xff] }
  0x16   :  { %98 = vmatpush.xpose.msra.mxu0 %v87_v15  ;;  %v65_v42 = vld [vmem:[%s2097_s0 + $0x20] sm:$0xff]  ;;  %v66_v49 = vld [vmem:[%s2097_s0 + $0x28] sm:$0xff]  ;;  %v63_v55 = vld [vmem:[%s2097_s0 + $0x10] sm:$0xff] }
  0x17   :  { %1135 = vmatpush.xpose.msra.mxu1 %v87_v15  ;;  %1136 = vmatpush.xpose.msra.mxu2 %v87_v15  ;;  %v69_v43 = vld [vmem:[%s2097_s0 + $0x40] sm:$0xff]  ;;  %v70_v50 = vld [vmem:[%s2097_s0 + $0x48] sm:$0xff]  ;;  %v67_v56 = vld [vmem:[%s2097_s0 + $0x30] sm:$0xff] }
  0x18   :  { %1137 = vmatpush.xpose.msra.mxu3 %v87_v15  ;;  %v73_v44 = vld [vmem:[%s2097_s0 + $0x60] sm:$0xff]  ;;  %v74_v51 = vld [vmem:[%s2097_s0 + $0x68] sm:$0xff]  ;;  %v71_v57 = vld [vmem:[%s2097_s0 + $0x50] sm:$0xff] }
  0x19   :  { %v304_v47 = vld [vmem:[%s2100_s3 + $0x40] sm:$0xff]  ;;  %v309_v52 = vld [vmem:[%s2100_s3 + $0x68] sm:$0xff]  ;;  %v75_v58 = vld [vmem:[%s2097_s0 + $0x70] sm:$0xff] }
  0x1a   :  { %99 = vmatpush.xpose.msra.mxu0 %v86_v16  ;;  %v308_v53 = vld [vmem:[%s2100_s3 + $0x60] sm:$0xff]  ;;  %v311_v59 = vld [vmem:[%s2100_s3 + $0x78] sm:$0xff]  ;;  %v310_v60 = vld [vmem:[%s2100_s3 + $0x70] sm:$0xff] }
  0x1b   :  { %1138 = vmatpush.xpose.msra.mxu1 %v86_v16  ;;  %1139 = vmatpush.xpose.msra.mxu2 %v86_v16  ;;  %v64_v61 = vld [vmem:[%s2097_s0 + $0x18] sm:$0xff] }
  0x1c   :  { %1140 = vmatpush.xpose.msra.mxu3 %v86_v16  ;;  %238 = vperm.xlu2 %1174, %v176_v17   ;;  %v68_v62 = vld [vmem:[%s2097_s0 + $0x38] sm:$0xff] }
  0x1d   :  { %233 = vperm.xlu1 %1173, %v175_v18   ;;  %228 = vperm.xlu0 %1172, %v174_v19   ;;  %v72_v63 = vld [vmem:[%s2097_s0 + $0x58] sm:$0xff] }
  0x1e   :  { %100 = vmatpush.xpose.msra.mxu0 %v85_v20  ;;  %v76_v0 = vld [vmem:[%s2097_s0 + $0x78] sm:$0xff] }
  0x1f   :  { %1141 = vmatpush.xpose.msra.mxu1 %v85_v20  ;;  %1142 = vmatpush.xpose.msra.mxu2 %v85_v20 }
  0x20   :  { %1143 = vmatpush.xpose.msra.mxu3 %v85_v20  ;;  %v1523_v20 = vld [vmem:[%s2101_s4] ss:$0 sm:$0xff]  ;;  %s1270_s4 = smov [#allocation4]  }
  0x22   :  { %101 = vmatpush.xpose.msra.mxu0 %v84_v21 }
  0x23   :  { %1144 = vmatpush.xpose.msra.mxu1 %v84_v21  ;;  %1145 = vmatpush.xpose.msra.mxu2 %v84_v21 }
  0x24   :  { %1146 = vmatpush.xpose.msra.mxu3 %v84_v21  ;;  %253 = vperm.xlu2 %1174, %v179_v22  }
  0x25   :  { %248 = vperm.xlu1 %1173, %v178_v23   ;;  %243 = vperm.xlu0 %1172, %v177_v24   ;;  %v1531_v24 = vld [vmem:[%s2102_s5] ss:$0 sm:$0xff]  ;;  %s1107_s5 = sshll.u32 %s1270_s4, 4  ;;  %s1108_s5 = int_to_ptr.vmem [resolvable:$true] %s1107_s5 }
  0x26   :  { %102 = vmatpush.xpose.msra.mxu0 %v83_v25 }
  0x27   :  { %1147 = vmatpush.xpose.msra.mxu1 %v83_v25  ;;  %1148 = vmatpush.xpose.msra.mxu2 %v83_v25 }
  0x28   :  { %1149 = vmatpush.xpose.msra.mxu3 %v83_v25 }
  0x2a   :  { %103 = vmatpush.xpose.msra.mxu0 %v82_v26 }
  0x2b   :  { %1150 = vmatpush.xpose.msra.mxu1 %v82_v26  ;;  %1151 = vmatpush.xpose.msra.mxu2 %v82_v26 }
  0x2c   :  { %1152 = vmatpush.xpose.msra.mxu3 %v82_v26  ;;  %316 = vperm.xlu2 %1174, %v297_v27  }
  0x2d   :  { %313 = vperm.xlu1 %1173, %v296_v28   ;;  %258 = vperm.xlu0 %1172, %v180_v29  }
  0x2e   :  { %104 = vmatpush.xpose.msra.mxu0 %v81_v30 }
  0x2f   :  { %1153 = vmatpush.xpose.msra.mxu1 %v81_v30  ;;  %1154 = vmatpush.xpose.msra.mxu2 %v81_v30 }
  0x30   :  { %1155 = vmatpush.xpose.msra.mxu3 %v81_v30 }
  0x32   :  { %105 = vmatpush.xpose.msra.mxu0 %v80_v31 }
  0x33   :  { %1156 = vmatpush.xpose.msra.mxu1 %v80_v31  ;;  %1157 = vmatpush.xpose.msra.mxu2 %v80_v31 }
  0x34   :  { %1158 = vmatpush.xpose.msra.mxu3 %v80_v31  ;;  %325 = vperm.xlu2 %1174, %v300_v32  }
  0x35   :  { %322 = vperm.xlu1 %1173, %v299_v33   ;;  %319 = vperm.xlu0 %1172, %v298_v34  }
  0x36   :  { %106 = vmatpush.xpose.msra.mxu0 %v79_v35 }
  0x37   :  { %1159 = vmatpush.xpose.msra.mxu1 %v79_v35  ;;  %1160 = vmatpush.xpose.msra.mxu2 %v79_v35 }
  0x38   :  { %1161 = vmatpush.xpose.msra.mxu3 %v79_v35 }
  0x3a   :  { %107 = vmatpush.xpose.msra.mxu0 %v78_v36 }
  0x3b   :  { %1162 = vmatpush.xpose.msra.mxu1 %v78_v36  ;;  %1163 = vmatpush.xpose.msra.mxu2 %v78_v36 }
  0x3c   :  { %1164 = vmatpush.xpose.msra.mxu3 %v78_v36  ;;  %334 = vperm.xlu2 %1174, %v303_v37  }
  0x3d   :  { %331 = vperm.xlu1 %1173, %v302_v38   ;;  %328 = vperm.xlu0 %1172, %v301_v39  }
  0x3e   :  { %108 = vmatpush.xpose.msra.mxu0 %v77_v40 }
  0x3f   :  { %1165 = vmatpush.xpose.msra.mxu1 %v77_v40  ;;  %1166 = vmatpush.xpose.msra.mxu2 %v77_v40 }
  0x40   :  { %1167 = vmatpush.xpose.msra.mxu3 %v77_v40 }
  0x41   :  { %109 = vmatmul.f32.vlgmr.msra.gmra.mxu0 %v61_v41 }
  0x42   :  { %121 = vmatmul.f32.vlgmr.msra.gmra.mxu1 %v65_v42  ;;  %133 = vmatmul.f32.vlgmr.msra.gmra.mxu2 %v69_v43 }
  0x43   :  { %145 = vmatmul.f32.vlgmr.msra.gmra.mxu3 %v73_v44 }
  0x44   :  { %343 = vperm.xlu2 %1174, %v306_v45  }
  0x45   :  { %340 = vperm.xlu1 %1173, %v305_v46   ;;  %337 = vperm.xlu0 %1172, %v304_v47  }
  0x49   :  { %112 = vmatmul.f32.gmra.mxu0 %v62_v48 }
  0x4a   :  { %124 = vmatmul.f32.gmra.mxu1 %v66_v49  ;;  %136 = vmatmul.f32.gmra.mxu2 %v70_v50 }
  0x4b   :  { %148 = vmatmul.f32.gmra.mxu3 %v74_v51 }
  0x4c   :  { %352 = vperm.xlu2 %1174, %v309_v52  }
  0x4d   :  { %349 = vperm.xlu1 %1173, %v308_v53   ;;  %346 = vperm.xlu0 %1172, %v307_v54  }
  0x51   :  { %115 = vmatmul.f32.gmra.mxu0 %v63_v55 }
  0x52   :  { %127 = vmatmul.f32.gmra.mxu1 %v67_v56  ;;  %139 = vmatmul.f32.gmra.mxu2 %v71_v57 }
  0x53   :  { %151 = vmatmul.f32.gmra.mxu3 %v75_v58 }
  0x55   :  { %358 = vperm.xlu1 %1173, %v311_v59   ;;  %355 = vperm.xlu0 %1172, %v310_v60  }
  0x59   :  { %118 = vmatmul.f32.gmra.mxu0 %v64_v61 }
  0x5a   :  { %130 = vmatmul.f32.gmra.mxu1 %v68_v62  ;;  %142 = vmatmul.f32.gmra.mxu2 %v72_v63 }
  0x5b   :  { %154 = vmatmul.f32.gmra.mxu3 %v76_v0 }
  0x5e   :  { %v204_v4 = vpop.permute.xlu2 %203 }
  0x5f   :  { %v268_v26 = vadd.f32 %v1523_v20, %v204_v4 }
  0x66   :  { %v209_v7 = vpop.permute.xlu2 %208 }
  0x67   :  { %v269_v52 = vadd.f32 %v1523_v20, %v209_v7 }
  0x6e   :  { %v224_v10 = vpop.permute.xlu2 %223 }
  0x6f   :  { %v272_v34 = vadd.f32 %v1523_v20, %v224_v10 }
  0x76   :  { %v1510_v13 = vpop.permute.xlu2 %238 }
  0x77   :  { %v184_v1 = vpop.permute.xlu0 %183  ;;  %v1498_v2 = vpop.permute.xlu1 %193 }
  0x78   :  { %v264_v23 = vadd.f32 %v1523_v20, %v184_v1  ;;  %v266_v56 = vadd.f32 %v1523_v20, %v1498_v2 }
  0x7e   :  { %v1516_v16 = vpop.permute.xlu2 %253 }
  0x7f   :  { %v189_v3 = vpop.permute.xlu0 %188  ;;  %v1500_v5 = vpop.permute.xlu1 %198 }
  0x80   :  { %v265_v36 = vadd.f32 %v1523_v20, %v189_v3 }
  0x86   :  { %v317_v19 = vpop.permute.xlu2 %316 }
  0x87   :  { %v1502_v6 = vpop.permute.xlu0 %213  ;;  %v1504_v8 = vpop.permute.xlu1 %218  ;;  %vm362_vm2 = vcmp.eq.s32.totalorder %v317_v19, %v1531_v24 }
  0x88   :  { %v270_v1 = vadd.f32 %v1523_v20, %v1502_v6 }
  0x8e   :  { %v326_v29 = vpop.permute.xlu2 %325 }
  0x8f   :  { %v229_v9 = vpop.permute.xlu0 %228  ;;  %v1506_v11 = vpop.permute.xlu1 %233  ;;  %vm365_vm1 = vcmp.eq.s32.totalorder %v326_v29, %v1531_v24 }
  0x90   :  { %v273_v45 = vadd.f32 %v1523_v20, %v229_v9  ;;  %v274_v62 = vadd.f32 %v1523_v20, %v1506_v11  ;;  %v267_v11 = vadd.f32 %v1523_v20, %v1500_v5 }
  0x96   :  { %v335_v53 = vpop.permute.xlu2 %334 }
  0x97   :  { %v1508_v12 = vpop.permute.xlu0 %243  ;;  %v1512_v14 = vpop.permute.xlu1 %248  ;;  %vm368_vm10 = vcmp.eq.s32.totalorder %v335_v53, %v1531_v24  ;;  %v1269_v53 = vmov -inf  }
  0x9e   :  { %v344_v2 = vpop.permute.xlu2 %343 }
  0x9f   :  { %v1514_v15 = vpop.permute.xlu0 %258  ;;  %v314_v17 = vpop.permute.xlu1 %313  ;;  %vm371_vm7 = vcmp.eq.s32.totalorder %v344_v2, %v1531_v24 }
  0xa0   :  { %vm361_vm0 = vcmp.eq.s32.totalorder %v314_v17, %v1531_v24 }
  0xa7   :  { %v1518_v18 = vpop.permute.xlu0 %319  ;;  %v1525_v21 = vpop.permute.xlu1 %322 }
  0xa8   :  { %vm363_vm6 = vcmp.eq.s32.totalorder %v1518_v18, %v1531_v24  ;;  %vm364_vm9 = vcmp.eq.s32.totalorder %v1525_v21, %v1531_v24  ;;  %v277_v21 = vadd.f32 %v1523_v20, %v1512_v14 }
  0xaf   :  { %v329_v22 = vpop.permute.xlu0 %328  ;;  %v1539_v35 = vpop.permute.xlu1 %331 }
  0xb0   :  { %vm366_vm5 = vcmp.eq.s32.totalorder %v329_v22, %v1531_v24  ;;  %vm367_vm8 = vcmp.eq.s32.totalorder %v1539_v35, %v1531_v24 }
  0xb7   :  { %v338_v37 = vpop.permute.xlu0 %337  ;;  %v1547_v47 = vpop.permute.xlu1 %340 }
  0xb8   :  { %vm369_vm3 = vcmp.eq.s32.totalorder %v338_v37, %v1531_v24  ;;  %vm370_vm4 = vcmp.eq.s32.totalorder %v1547_v47, %v1531_v24 }
  0xbe   :  { %v110_v25 = vpop.f32.mrf.mxu0 }
  0xbf   :  { %v280_v27 = vadd.f32 %v264_v23, %v110_v25  ;;  %v122_v28 = vpop.f32.mrf.mxu1  ;;  %v271_v25 = vadd.f32 %v1523_v20, %v1504_v8  ;;  %v276_v8 = vadd.f32 %v1523_v20, %v1508_v12  ;;  %v278_v12 = vadd.f32 %v1523_v20, %v1516_v16 }
  0xc0   :  { %v284_v30 = vadd.f32 %v268_v26, %v122_v28 }
  0xc1   :  { %v393_v31 = vsel %vm361_vm0, inf, %v280_v27  ;;  %v377_v32 = vsel %vm361_vm0, %v280_v27, -inf  ;;  %vm28_vm0 = vcmask 7168  }
  0xc2   :  { %506 = vmin.xlane.f32.xlu0 %v393_v31  ;;  %425 = vmax.xlane.f32.xlu2 %v377_v32  ;;  %v397_v33 = vsel %vm365_vm1, inf, %v284_v30  ;;  %v381_v43 = vsel %vm365_vm1, %v284_v30, -inf  ;;  %v347_v30 = vpop.permute.xlu0 %346  ;;  %v353_v32 = vpop.permute.xlu2 %352  ;;  %29 = vst.msk [vmem:[#allocation2] sm:$0xff] %vm28_vm0, %v1269_v53 }
  0xc3   :  { %514 = vmin.xlane.f32.xlu1 %v397_v33  ;;  %vm374_vm11 = vcmp.eq.s32.totalorder %v353_v32, %v1531_v24  ;;  %vm372_vm14 = vcmp.eq.s32.totalorder %v347_v30, %v1531_v24  ;;  %30 = vst.msk [vmem:[#allocation2 + $0x8] sm:$0xff] %vm28_vm0, %v1269_v53 }
  0xc4   :  { %31 = vst.msk [vmem:[#allocation2 + $0x10] sm:$0xff] %vm28_vm0, %v1269_v53 }
  0xc5   :  { %v134_v38 = vpop.f32.mrf.mxu2  ;;  %32 = vst.msk [vmem:[#allocation2 + $0x18] sm:$0xff] %vm28_vm0, %v1269_v53 }
  0xc6   :  { %v288_v39 = vadd.f32 %v272_v34, %v134_v38  ;;  %v113_v40 = vpop.f32.mrf.mxu0  ;;  %v146_v18 = vpop.f32.mrf.mxu3  ;;  %33 = vst.msk [vmem:[#allocation2 + $0x20] sm:$0xff] %vm28_vm0, %v1269_v53 }
  0xc7   :  { %v281_v41 = vadd.f32 %v265_v36, %v113_v40  ;;  %v125_v51 = vpop.f32.mrf.mxu1  ;;  %v350_v34 = vpop.permute.xlu1 %349  ;;  %v292_v35 = vadd.f32 %v276_v8, %v146_v18  ;;  %34 = vst.msk [vmem:[#allocation2 + $0x28] sm:$0xff] %vm28_vm0, %v1269_v53 }
  0xc8   :  { %v401_v42 = vsel %vm369_vm3, inf, %v288_v39  ;;  %v385_v49 = vsel %vm369_vm3, %v288_v39, -inf  ;;  %v285_v57 = vadd.f32 %v269_v52, %v125_v51  ;;  %vm373_vm12 = vcmp.eq.s32.totalorder %v350_v34, %v1531_v24  ;;  %35 = vst.msk [vmem:[#allocation2 + $0x30] sm:$0xff] %vm28_vm0, %v1269_v53 }
  0xc9   :  { %v394_v44 = vsel %vm362_vm2, inf, %v281_v41  ;;  %v378_v50 = vsel %vm362_vm2, %v281_v41, -inf  ;;  %v389_v38 = vsel %vm373_vm12, %v292_v35, -inf  ;;  %36 = vst.msk [vmem:[#allocation2 + $0x38] sm:$0xff] %vm28_vm0, %v1269_v53 }
  0xca   :  { %522 = vmin.xlane.f32.xlu0 %v401_v42  ;;  %433 = vmax.xlane.f32.xlu2 %v381_v43  ;;  %v382_v59 = vsel %vm366_vm5, %v285_v57, -inf  ;;  %v398_v60 = vsel %vm366_vm5, inf, %v285_v57  ;;  %v356_v39 = vpop.permute.xlu0 %355  ;;  %v405_v42 = vsel %vm373_vm12, inf, %v292_v35  ;;  %37 = vst.msk [vmem:[#allocation2 + $0x40] sm:$0xff] %vm28_vm0, %v1269_v53 }
  0xcb   :  { %508 = vmin.xlane.f32.xlu1 %v394_v44  ;;  %vm375_vm13 = vcmp.eq.s32.totalorder %v356_v39, %v1531_v24  ;;  %v275_v44 = vadd.f32 %v1523_v20, %v1510_v13  ;;  %38 = vst.msk [vmem:[#allocation2 + $0x48] sm:$0xff] %vm28_vm0, %v1269_v53 }
  0xcc   :  { %39 = vst.msk [vmem:[#allocation2 + $0x50] sm:$0xff] %vm28_vm0, %v1269_v53 }
  0xcd   :  { %v137_v46 = vpop.f32.mrf.mxu2  ;;  %40 = vst.msk [vmem:[#allocation2 + $0x58] sm:$0xff] %vm28_vm0, %v1269_v53 }
  0xce   :  { %v1549_v48 = vadd.f32 %v273_v45, %v137_v46  ;;  %v116_v55 = vpop.f32.mrf.mxu0  ;;  %v149_v27 = vpop.f32.mrf.mxu3  ;;  %v279_v46 = vadd.f32 %v1523_v20, %v1514_v15  ;;  %v1268_v15 = vmov inf   ;;  %41 = vst.msk [vmem:[#allocation2 + $0x60] sm:$0xff] %vm28_vm0, %v1269_v53 }
  0xcf   :  { %v282_v58 = vadd.f32 %v266_v56, %v116_v55  ;;  %v128_v0 = vpop.f32.mrf.mxu1  ;;  %v293_v33 = vadd.f32 %v277_v21, %v149_v27  ;;  %49 = vst.msk [vmem:[#allocation3 + $0x20] sm:$0xff] %vm28_vm0, %v1268_v15 }
  0xd0   :  { %v386_v54 = vsel %vm370_vm4, %v1549_v48, -inf  ;;  %v286_v4 = vadd.f32 %v270_v1, %v128_v0  ;;  %v402_v14 = vsel %vm370_vm4, inf, %v1549_v48  ;;  %v359_v48 = vpop.permute.xlu1 %358  ;;  %45 = vst.msk [vmem:[#allocation3] sm:$0xff] %vm28_vm0, %v1268_v15 }
  0xd1   :  { %v379_v63 = vsel %vm363_vm6, %v282_v58, -inf  ;;  %v395_v9 = vsel %vm363_vm6, inf, %v282_v58  ;;  %v390_v36 = vsel %vm374_vm11, %v293_v33, -inf  ;;  %v406_v45 = vsel %vm374_vm11, inf, %v293_v33  ;;  %46 = vst.msk [vmem:[#allocation3 + $0x8] sm:$0xff] %vm28_vm0, %v1268_v15  ;;  %v417_v18 = vld [vmem:[#allocation2 + $0x40] sm:$0xff] }
  0xd2   :  { %441 = vmax.xlane.f32.xlu2 %v385_v49  ;;  %427 = vmax.xlane.f32.xlu0 %v378_v50  ;;  %v383_v17 = vsel %vm367_vm8, %v286_v4, -inf  ;;  %v399_v19 = vsel %vm367_vm8, inf, %v286_v4  ;;  %vm376_vm15 = vcmp.eq.s32.totalorder %v359_v48, %v1531_v24  ;;  %47 = vst.msk [vmem:[#allocation3 + $0x10] sm:$0xff] %vm28_vm0, %v1268_v15  ;;  %v414_v33 = vld [vmem:[#allocation2 + $0x28] sm:$0xff] }
  0xd3   :  { %443 = vmax.xlane.f32.xlu1 %v386_v54  ;;  %48 = vst.msk [vmem:[#allocation3 + $0x18] sm:$0xff] %vm28_vm0, %v1268_v15  ;;  %v409_v54 = vld [vmem:[#allocation2] sm:$0xff] }
  0xd4   :  { %50 = vst.msk [vmem:[#allocation3 + $0x28] sm:$0xff] %vm28_vm0, %v1268_v15 }
  0xd5   :  { %v140_v61 = vpop.f32.mrf.mxu2  ;;  %51 = vst.msk [vmem:[#allocation3 + $0x30] sm:$0xff] %vm28_vm0, %v1268_v15 }
  0xd6   :  { %v290_v3 = vadd.f32 %v274_v62, %v140_v61  ;;  %v119_v10 = vpop.f32.mrf.mxu0  ;;  %v152_v37 = vpop.f32.mrf.mxu3  ;;  %52 = vst.msk [vmem:[#allocation3 + $0x38] sm:$0xff] %vm28_vm0, %v1268_v15  ;;  %v494_v55 = vld [vmem:[#allocation3 + $0x20] sm:$0xff] }
  0xd7   :  { %v283_v6 = vadd.f32 %v267_v11, %v119_v10  ;;  %v131_v23 = vpop.f32.mrf.mxu1  ;;  %v294_v40 = vadd.f32 %v278_v12, %v152_v37  ;;  %53 = vst.msk [vmem:[#allocation3 + $0x40] sm:$0xff] %vm28_vm0, %v1268_v15  ;;  %v490_v24 = vld [vmem:[#allocation3] sm:$0xff]  ;;  %v411_v12 = vld [vmem:[#allocation2 + $0x10] sm:$0xff] }
  0xd8   :  { %v387_v7 = vsel %vm371_vm7, %v290_v3, -inf  ;;  %v403_v26 = vsel %vm371_vm7, inf, %v290_v3  ;;  %v287_v5 = vadd.f32 %v271_v25, %v131_v23  ;;  %54 = vst.msk [vmem:[#allocation3 + $0x48] sm:$0xff] %vm28_vm0, %v1268_v15  ;;  %v491_v2 = vld [vmem:[#allocation3 + $0x8] sm:$0xff] }
  0xd9   :  { %v396_v22 = vsel %vm364_vm9, inf, %v283_v6  ;;  %v380_v29 = vsel %vm364_vm9, %v283_v6, -inf  ;;  %v407_v41 = vsel %vm375_vm13, inf, %v294_v40  ;;  %v391_v52 = vsel %vm375_vm13, %v294_v40, -inf  ;;  %55 = vst.msk [vmem:[#allocation3 + $0x50] sm:$0xff] %vm28_vm0, %v1268_v15  ;;  %v418_v23 = vld [vmem:[#allocation2 + $0x48] sm:$0xff] }
  0xda   :  { %435 = vmax.xlane.f32.xlu2 %v382_v59  ;;  %516 = vmin.xlane.f32.xlu0 %v398_v60  ;;  %v384_v28 = vsel %vm368_vm10, %v287_v5, -inf  ;;  %v400_v31 = vsel %vm368_vm10, inf, %v287_v5  ;;  %56 = vst.msk [vmem:[#allocation3 + $0x58] sm:$0xff] %vm28_vm0, %v1268_v15 }
  0xdb   :  { %429 = vmax.xlane.f32.xlu1 %v379_v63  ;;  %57 = vst.msk [vmem:[#allocation3 + $0x60] sm:$0xff] %vm28_vm0, %v1268_v15  ;;  %v413_v63 = vld [vmem:[#allocation2 + $0x20] sm:$0xff]  ;;  %v495_v34 = vld [vmem:[#allocation3 + $0x28] sm:$0xff] }
  0xdc   :  { %58 = vst.msk [vmem:[#allocation3 + $0x68] sm:$0xff] %vm28_vm0, %v1268_v15 }
  0xdd   :  { %v143_v43 = vpop.f32.mrf.mxu2  ;;  %59 = vst.msk [vmem:[#allocation3 + $0x70] sm:$0xff] %vm28_vm0, %v1268_v15 }
  0xde   :  { %v155_v16 = vpop.f32.mrf.mxu3  ;;  %v291_v47 = vadd.f32 %v275_v44, %v143_v43  ;;  %60 = vst.msk [vmem:[#allocation3 + $0x78] sm:$0xff] %vm28_vm0, %v1268_v15  ;;  %v498_v62 = vld [vmem:[#allocation3 + $0x40] sm:$0xff] }
  0xdf   :  { %v295_v49 = vadd.f32 %v279_v46, %v155_v16  ;;  %42 = vst.msk [vmem:[#allocation2 + $0x68] sm:$0xff] %vm28_vm0, %v1269_v53 }
  0xe0   :  { %v404_v50 = vsel %vm372_vm14, inf, %v291_v47  ;;  %v388_v51 = vsel %vm372_vm14, %v291_v47, -inf  ;;  %43 = vst.msk [vmem:[#allocation2 + $0x70] sm:$0xff] %vm28_vm0, %v1269_v53 }
  0xe1   :  { %v392_v13 = vsel %vm376_vm15, %v295_v49, -inf  ;;  %v408_v20 = vsel %vm376_vm15, inf, %v295_v49  ;;  %44 = vst.msk [vmem:[#allocation2 + $0x78] sm:$0xff] %vm28_vm0, %v1269_v53 }
  0xe2   :  { %445 = vmax.xlane.f32.xlu0 %v387_v7  ;;  %510 = vmin.xlane.f32.xlu2 %v395_v9 }
  0xe3   :  { %437 = vmax.xlane.f32.xlu1 %v383_v17 }
  0xea   :  { %518 = vmin.xlane.f32.xlu2 %v399_v19  ;;  %512 = vmin.xlane.f32.xlu0 %v396_v22  ;;  %v410_v19 = vld [vmem:[#allocation2 + $0x8] sm:$0xff] }
  0xeb   :  { %526 = vmin.xlane.f32.xlu1 %v403_v26 }
  0xf2   :  { %439 = vmax.xlane.f32.xlu0 %v384_v28  ;;  %431 = vmax.xlane.f32.xlu2 %v380_v29 }
  0xf3   :  { %520 = vmin.xlane.f32.xlu1 %v400_v31 }
  0xfa   :  { %451 = vmax.xlane.f32.xlu0 %v390_v36  ;;  %524 = vmin.xlane.f32.xlu2 %v402_v14 }
  0xfb   :  { %449 = vmax.xlane.f32.xlu1 %v389_v38 }
 0x102   :  { %534 = vmin.xlane.f32.xlu0 %v407_v41  ;;  %530 = vmin.xlane.f32.xlu2 %v405_v42 }
 0x103   :  { %532 = vmin.xlane.f32.xlu1 %v406_v45 }
 0x10a   :  { %528 = vmin.xlane.f32.xlu0 %v404_v50  ;;  %447 = vmax.xlane.f32.xlu2 %v388_v51 }
 0x10b   :  { %455 = vmax.xlane.f32.xlu1 %v392_v13  ;;  %v419_v13 = vld [vmem:[#allocation2 + $0x50] sm:$0xff] }
 0x112   :  { %453 = vmax.xlane.f32.xlu2 %v391_v52  ;;  %v492_v52 = vld [vmem:[#allocation3 + $0x10] sm:$0xff] }
 0x11a   :  { %536 = vmin.xlane.f32.xlu2 %v408_v20 }
 0x135   :  { %v507_v56 = vpop.xlane.xlu0 %506  ;;  %v426_v57 = vpop.xlane.xlu2 %425 }
 0x136   :  { %v538_v58 = vmin.f32 %v490_v24, %v507_v56  ;;  %v457_v59 = vmax.f32 %v409_v54, %v426_v57  ;;  %v515_v60 = vpop.xlane.xlu1 %514  ;;  %v415_v57 = vld [vmem:[#allocation2 + $0x30] sm:$0xff] }
 0x137   :  { %v542_v61 = vmin.f32 %v494_v55, %v515_v60 }
 0x138   :  { %554 = vst.msk [vmem:[#allocation3] sm:$0xff] %vm28_vm0, %v538_v58 }
 0x139   :  { %474 = vst.msk [vmem:[#allocation2] sm:$0xff] %vm28_vm0, %v457_v59 }
 0x13a   :  { %558 = vst.msk [vmem:[#allocation3 + $0x20] sm:$0xff] %vm28_vm0, %v542_v61 }
 0x13d   :  { %v523_v0 = vpop.xlane.xlu0 %522  ;;  %v434_v1 = vpop.xlane.xlu2 %433 }
 0x13e   :  { %v546_v3 = vmin.f32 %v498_v62, %v523_v0  ;;  %v461_v4 = vmax.f32 %v413_v63, %v434_v1  ;;  %v509_v7 = vpop.xlane.xlu1 %508 }
 0x13f   :  { %v797_v9 = vld [vmem:[#allocation3] sm:$0xff]  ;;  %v539_v10 = vmin.f32 %v491_v2, %v509_v7 }
 0x140   :  { %562 = vst.msk [vmem:[#allocation3 + $0x40] sm:$0xff] %vm28_vm0, %v546_v3  ;;  %v573_v11 = vld [vmem:[#allocation2] sm:$0xff]  ;;  %v1648_v17 = vmax.f32 %v797_v9, 1e-12 }
 0x141   :  { %478 = vst.msk [vmem:[#allocation2 + $0x20] sm:$0xff] %vm28_vm0, %v461_v4  ;;  %v1651_v6 = vmax.f32 %v573_v11, 1e-12  ;;  %v801_v42 = vld [vmem:[#allocation3 + $0x20] sm:$0xff] }
 0x142   :  { %555 = vst.msk [vmem:[#allocation3 + $0x8] sm:$0xff] %vm28_vm0, %v539_v10  ;;  %1177 = vrsqrt.f32 %v1648_v17  ;;  %v1668_v49 = vmax.f32 %v801_v42, 1e-12  ;;  %vm836_vm1 = vcmp.eq.f32.partialorder %v1648_v17, inf  ;;  %vm838_vm2 = vcmp.eq.f32.partialorder %v1648_v17, 0.0  ;;  %v416_v42 = vld [vmem:[#allocation2 + $0x38] sm:$0xff] }
 0x143   :  { %1179 = vrsqrt.f32 %v1651_v6  ;;  %vm612_vm3 = vcmp.eq.f32.partialorder %v1651_v6, inf  ;;  %v839_v53 = vand.u32 2147483648, %v1648_v17  ;;  %vm614_vm4 = vcmp.eq.f32.partialorder %v1651_v6, 0.0 }
 0x144   :  { %v615_v58 = vand.u32 2147483648, %v1651_v6  ;;  %vm884_vm13 = vcmp.eq.f32.partialorder %v1668_v49, inf  ;;  %vm886_vm14 = vcmp.eq.f32.partialorder %v1668_v49, 0.0 }
 0x145   :  { %v442_v22 = vpop.xlane.xlu2 %441  ;;  %v428_v25 = vpop.xlane.xlu0 %427 }
 0x146   :  { %v465_v26 = vmax.f32 %v417_v18, %v442_v22  ;;  %v458_v5 = vmax.f32 %v410_v19, %v428_v25  ;;  %v444_v27 = vpop.xlane.xlu1 %443  ;;  %v496_v22 = vld [vmem:[#allocation3 + $0x30] sm:$0xff] }
 0x147   :  { %v466_v29 = vmax.f32 %v418_v23, %v444_v27  ;;  %v493_v23 = vld [vmem:[#allocation3 + $0x18] sm:$0xff] }
 0x148   :  { %v1178_v28 = vpop.eup %1177  ;;  %482 = vst.msk [vmem:[#allocation2 + $0x40] sm:$0xff] %vm28_vm0, %v465_v26  ;;  %v577_v54 = vld [vmem:[#allocation2 + $0x20] sm:$0xff] }
 0x149   :  { %v1180_v21 = vpop.eup %1179  ;;  %475 = vst.msk [vmem:[#allocation2 + $0x8] sm:$0xff] %vm28_vm0, %v458_v5  ;;  %v830_v30 = vmul.f32 %v1178_v28, %v1648_v17  ;;  %v798_v31 = vld [vmem:[#allocation3 + $0x8] sm:$0xff]  ;;  %v1686_v3 = vmax.f32 %v577_v54, 1e-12 }
 0x14a   :  { %483 = vst.msk [vmem:[#allocation2 + $0x48] sm:$0xff] %vm28_vm0, %v466_v29  ;;  %v606_v8 = vmul.f32 %v1180_v21, %v1651_v6  ;;  %v1661_v32 = vmax.f32 %v798_v31, 1e-12 }
 0x14b   :  { %v831_v35 = vmul.f32 %v1178_v28, %v830_v30  ;;  %vm660_vm15 = vcmp.eq.f32.partialorder %v1686_v3, inf }
 0x14c   :  { %v607_v36 = vmul.f32 %v1180_v21, %v606_v8  ;;  %1181 = vrsqrt.f32 %v1661_v32  ;;  %vm848_vm5 = vcmp.eq.f32.partialorder %v1661_v32, inf  ;;  %vm850_vm6 = vcmp.eq.f32.partialorder %v1661_v32, 0.0 }
 0x14d   :  { %v436_v14 = vpop.xlane.xlu2 %435  ;;  %v517_v37 = vpop.xlane.xlu0 %516  ;;  %v832_v38 = vmul.f32 0.5, %v831_v35 }
 0x14e   :  { %v462_v39 = vmax.f32 %v414_v33, %v436_v14  ;;  %v543_v40 = vmin.f32 %v495_v34, %v517_v37  ;;  %v608_v41 = vmul.f32 0.5, %v607_v36  ;;  %v430_v43 = vpop.xlane.xlu1 %429 }
 0x14f   :  { %v833_v44 = vsub.f32 1.5, %v832_v38  ;;  %v459_v45 = vmax.f32 %v411_v12, %v430_v43  ;;  %v412_v43 = vld [vmem:[#allocation2 + $0x18] sm:$0xff] }
 0x150   :  { %479 = vst.msk [vmem:[#allocation2 + $0x28] sm:$0xff] %vm28_vm0, %v462_v39  ;;  %v609_v16 = vsub.f32 1.5, %v608_v41  ;;  %v574_v46 = vld [vmem:[#allocation2 + $0x8] sm:$0xff] }
 0x151   :  { %559 = vst.msk [vmem:[#allocation3 + $0x28] sm:$0xff] %vm28_vm0, %v543_v40  ;;  %v834_v47 = vmul.f32 %v1178_v28, %v833_v44  ;;  %v1666_v48 = vmax.f32 %v574_v46, 1e-12  ;;  %v500_v28 = vld [vmem:[#allocation3 + $0x50] sm:$0xff]  ;;  %v851_v44 = vand.u32 2147483648, %v1661_v32 }
 0x152   :  { %v1182_v50 = vpop.eup %1181  ;;  %476 = vst.msk [vmem:[#allocation2 + $0x10] sm:$0xff] %vm28_vm0, %v459_v45  ;;  %v610_v51 = vmul.f32 %v1180_v21, %v609_v16 }
 0x153   :  { %v835_v15 = vmul.f32 %v834_v47, %v1648_v17  ;;  %1183 = vrsqrt.f32 %v1666_v48  ;;  %v842_v24 = vmul.f32 %v1182_v50, %v1661_v32  ;;  %vm624_vm7 = vcmp.eq.f32.partialorder %v1666_v48, inf }
 0x154   :  { %v611_v20 = vmul.f32 %v610_v51, %v1651_v6  ;;  %1185 = vrsqrt.f32 %v1668_v49  ;;  %vm626_vm8 = vcmp.eq.f32.partialorder %v1666_v48, 0.0 }
 0x155   :  { %v446_v55 = vpop.xlane.xlu0 %445  ;;  %v511_v56 = vpop.xlane.xlu2 %510  ;;  %v837_v59 = vsel %vm836_vm1, %v1648_v17, %v835_v15  ;;  %v843_v2 = vmul.f32 %v1182_v50, %v842_v24  ;;  %1187 = vrsqrt.f32 %v1686_v3  ;;  %vm662_vm1 = vcmp.eq.f32.partialorder %v1686_v3, 0.0 }
 0x156   :  { %v467_v60 = vmax.f32 %v419_v13, %v446_v55  ;;  %v540_v61 = vmin.f32 %v492_v52, %v511_v56  ;;  %v613_v62 = vsel %vm612_vm3, %v1651_v6, %v611_v20  ;;  %v840_v63 = vsel %vm838_vm2, %v839_v53, %v837_v59  ;;  %v438_v0 = vpop.xlane.xlu1 %437  ;;  %v497_v52 = vld [vmem:[#allocation3 + $0x38] sm:$0xff] }
 0x157   :  { %v616_v1 = vsel %vm614_vm4, %v615_v58, %v613_v62  ;;  %v463_v4 = vmax.f32 %v415_v57, %v438_v0  ;;  %v844_v10 = vmul.f32 0.5, %v843_v2  ;;  %v578_v39 = vld [vmem:[#allocation2 + $0x28] sm:$0xff]  ;;  %v627_v53 = vand.u32 2147483648, %v1666_v48 }
 0x158   :  { %484 = vst.msk [vmem:[#allocation2 + $0x50] sm:$0xff] %vm28_vm0, %v467_v60  ;;  %v1021_v7 = vsub.f32 %v616_v1, %v840_v63  ;;  %v802_v46 = vld [vmem:[#allocation3 + $0x28] sm:$0xff]  ;;  %v1718_v13 = vmax.f32 %v578_v39, 1e-12 }
 0x159   :  { %v1184_v9 = vpop.eup %1183  ;;  %556 = vst.msk [vmem:[#allocation3 + $0x10] sm:$0xff] %vm28_vm0, %v540_v61  ;;  %v575_v11 = vld [vmem:[#allocation2 + $0x10] sm:$0xff]  ;;  %v845_v25 = vsub.f32 1.5, %v844_v10  ;;  %v1724_v57 = vmax.f32 %v802_v46, 1e-12  ;;  %v422_v10 = vld [vmem:[#allocation2 + $0x68] sm:$0xff] }
 0x15a   :  { %480 = vst.msk [vmem:[#allocation2 + $0x30] sm:$0xff] %vm28_vm0, %v463_v4  ;;  %v1037_v6 = vadd.f32 0.3, %v1021_v7  ;;  %v618_v17 = vmul.f32 %v1184_v9, %v1666_v48  ;;  %v1692_v18 = vmax.f32 %v575_v11, 1e-12  ;;  %v1694_v19 = vpop.eup %1185  ;;  %v499_v11 = vld [vmem:[#allocation3 + $0x48] sm:$0xff] }
 0x15b   :  { %v846_v21 = vmul.f32 %v1182_v50, %v845_v25  ;;  %v878_v34 = vmul.f32 %v1694_v19, %v1668_v49  ;;  %v1702_v12 = vpop.eup %1187 }
 0x15c   :  { %v1053_v26 = vmax.f32 %v1037_v6, 0.0  ;;  %v619_v5 = vmul.f32 %v1184_v9, %v618_v17  ;;  %1189 = vrsqrt.f32 %v1692_v18  ;;  %v654_v51 = vmul.f32 %v1702_v12, %v1686_v3 }
 0x15d   :  { %v519_v27 = vpop.xlane.xlu2 %518  ;;  %v513_v29 = vpop.xlane.xlu0 %512  ;;  %v847_v14 = vmul.f32 %v846_v21, %v1661_v32  ;;  %v879_v16 = vmul.f32 %v1694_v19, %v878_v34  ;;  %vm636_vm9 = vcmp.eq.f32.partialorder %v1692_v18, inf  ;;  %vm638_vm10 = vcmp.eq.f32.partialorder %v1692_v18, 0.0 }
 0x15e   :  { %v544_v30 = vmin.f32 %v496_v22, %v519_v27  ;;  %v541_v31 = vmin.f32 %v493_v23, %v513_v29  ;;  %1069 = vxpose.xlu0.b32.start [1/16] (narrow) %v1053_v26, 8  ;;  %v620_v8 = vmul.f32 0.5, %v619_v5  ;;  %v527_v33 = vpop.xlane.xlu1 %526  ;;  %v655_v2 = vmul.f32 %v1702_v12, %v654_v51  ;;  %v421_v5 = vld [vmem:[#allocation2 + $0x60] sm:$0xff] }
 0x15f   :  { %v548_v35 = vmin.f32 %v500_v28, %v527_v33  ;;  %v849_v50 = vsel %vm848_vm5, %v1661_v32, %v847_v14  ;;  %v880_v62 = vmul.f32 0.5, %v879_v16  ;;  %v639_v51 = vand.u32 2147483648, %v1692_v18 }
 0x160   :  { %560 = vst.msk [vmem:[#allocation3 + $0x30] sm:$0xff] %vm28_vm0, %v544_v30  ;;  %v621_v36 = vsub.f32 1.5, %v620_v8  ;;  %v799_v37 = vld [vmem:[#allocation3 + $0x10] sm:$0xff]  ;;  %v852_v60 = vsel %vm850_vm6, %v851_v44, %v849_v50  ;;  %v656_v26 = vmul.f32 0.5, %v655_v2  ;;  %v502_v50 = vld [vmem:[#allocation3 + $0x60] sm:$0xff]  ;;  %vm672_vm6 = vcmp.eq.f32.partialorder %v1718_v13, inf }
 0x161   :  { %557 = vst.msk [vmem:[#allocation3 + $0x18] sm:$0xff] %vm28_vm0, %v541_v31  ;;  %v1705_v38 = vmax.f32 %v799_v37, 1e-12  ;;  %v881_v6 = vsub.f32 1.5, %v880_v62  ;;  %v579_v8 = vld [vmem:[#allocation2 + $0x30] sm:$0xff] }
 0x162   :  { %v1190_v40 = vpop.eup %1189  ;;  %564 = vst.msk [vmem:[#allocation3 + $0x50] sm:$0xff] %vm28_vm0, %v548_v35  ;;  %v622_v41 = vmul.f32 %v1184_v9, %v621_v36  ;;  %v1755_v44 = vmax.f32 %v579_v8, 1e-12 }
 0x163   :  { %v630_v45 = vmul.f32 %v1190_v40, %v1692_v18  ;;  %1191 = vrsqrt.f32 %v1705_v38  ;;  %v882_v35 = vmul.f32 %v1694_v19, %v881_v6  ;;  %vm860_vm11 = vcmp.eq.f32.partialorder %v1705_v38, inf }
 0x164   :  { %v623_v47 = vmul.f32 %v622_v41, %v1666_v48  ;;  %1193 = vrsqrt.f32 %v1718_v13  ;;  %v657_v41 = vsub.f32 1.5, %v656_v26  ;;  %vm862_vm12 = vcmp.eq.f32.partialorder %v1705_v38, 0.0 }
 0x165   :  { %v440_v15 = vpop.xlane.xlu0 %439  ;;  %v432_v20 = vpop.xlane.xlu2 %431  ;;  %v631_v24 = vmul.f32 %v1190_v40, %v630_v45  ;;  %1195 = vrsqrt.f32 %v1724_v57 }
 0x166   :  { %v464_v54 = vmax.f32 %v416_v42, %v440_v15  ;;  %v460_v55 = vmax.f32 %v412_v43, %v432_v20  ;;  %v625_v56 = vsel %vm624_vm7, %v1666_v48, %v623_v47  ;;  %v521_v58 = vpop.xlane.xlu1 %520  ;;  %v504_v47 = vld [vmem:[#allocation3 + $0x70] sm:$0xff]  ;;  %vm896_vm7 = vcmp.eq.f32.partialorder %v1724_v57, inf }
 0x167   :  { %v628_v59 = vsel %vm626_vm8, %v627_v53, %v625_v56  ;;  %v632_v61 = vmul.f32 0.5, %v631_v24  ;;  %v545_v63 = vmin.f32 %v497_v52, %v521_v58  ;;  %v803_v17 = vld [vmem:[#allocation3 + $0x30] sm:$0xff]  ;;  %v503_v24 = vld [vmem:[#allocation3 + $0x68] sm:$0xff]  ;;  %v863_v56 = vand.u32 2147483648, %v1705_v38 }
 0x168   :  { %481 = vst.msk [vmem:[#allocation2 + $0x38] sm:$0xff] %vm28_vm0, %v464_v54  ;;  %v1022_v0 = vsub.f32 %v628_v59, %v852_v60  ;;  %v800_v1 = vld [vmem:[#allocation3 + $0x18] sm:$0xff]  ;;  %v1740_v33 = vmax.f32 %v803_v17, 1e-12  ;;  %vm674_vm8 = vcmp.eq.f32.partialorder %v1718_v13, 0.0 }
 0x169   :  { %v1192_v4 = vpop.eup %1191  ;;  %477 = vst.msk [vmem:[#allocation2 + $0x18] sm:$0xff] %vm28_vm0, %v460_v55  ;;  %v633_v48 = vsub.f32 1.5, %v632_v61  ;;  %v1732_v7 = vmax.f32 %v800_v1, 1e-12 }
 0x16a   :  { %561 = vst.msk [vmem:[#allocation3 + $0x38] sm:$0xff] %vm28_vm0, %v545_v63  ;;  %v1038_v32 = vadd.f32 0.3, %v1022_v0  ;;  %v854_v9 = vmul.f32 %v1192_v4, %v1705_v38  ;;  %v1738_v29 = vpop.eup %1193 }
 0x16b   :  { %1197 = vrsqrt.f32 %v1732_v7  ;;  %v634_v23 = vmul.f32 %v1190_v40, %v633_v48  ;;  %v1743_v36 = vpop.eup %1195  ;;  %v666_v19 = vmul.f32 %v1738_v29, %v1718_v13  ;;  %v658_v48 = vmul.f32 %v1702_v12, %v657_v41 }
 0x16c   :  { %v1054_v22 = vmax.f32 %v1038_v32, 0.0  ;;  %v855_v25 = vmul.f32 %v1192_v4, %v854_v9  ;;  %1199 = vrsqrt.f32 %v1740_v33  ;;  %v890_v52 = vmul.f32 %v1743_v36, %v1724_v57 }
 0x16d   :  { %v452_v27 = vpop.xlane.xlu0 %451  ;;  %v525_v28 = vpop.xlane.xlu2 %524  ;;  %v635_v37 = vmul.f32 %v634_v23, %v1692_v18  ;;  %v667_v58 = vmul.f32 %v1738_v29, %v666_v19  ;;  %vm872_vm2 = vcmp.eq.f32.partialorder %v1732_v7, inf  ;;  %vm874_vm3 = vcmp.eq.f32.partialorder %v1732_v7, 0.0 }
 0x16e   :  { %v470_v21 = vmax.f32 %v422_v10, %v452_v27  ;;  %v547_v30 = vmin.f32 %v499_v11, %v525_v28  ;;  %1070 = vxpose.xlu0.b32.cont [2/16] (narrow) %v1054_v22, 8  ;;  %v856_v31 = vmul.f32 0.5, %v855_v25  ;;  %v450_v34 = vpop.xlane.xlu1 %449  ;;  %v891_v32 = vmul.f32 %v1743_v36, %v890_v52  ;;  %v581_v25 = vld [vmem:[#allocation2 + $0x40] sm:$0xff]  ;;  %v420_v27 = vld [vmem:[#allocation2 + $0x58] sm:$0xff] }
 0x16f   :  { %v469_v14 = vmax.f32 %v421_v5, %v450_v34  ;;  %v580_v46 = vld [vmem:[#allocation2 + $0x38] sm:$0xff]  ;;  %v637_v15 = vsel %vm636_vm9, %v1692_v18, %v635_v37  ;;  %v883_v18 = vmul.f32 %v882_v35, %v1668_v49  ;;  %v668_v22 = vmul.f32 0.5, %v667_v58 }
 0x170   :  { %487 = vst.msk [vmem:[#allocation2 + $0x68] sm:$0xff] %vm28_vm0, %v470_v21  ;;  %v857_v39 = vsub.f32 1.5, %v856_v31  ;;  %v576_v40 = vld [vmem:[#allocation2 + $0x18] sm:$0xff]  ;;  %v1776_v59 = vmax.f32 %v580_v46, 1e-12  ;;  %v640_v2 = vsel %vm638_vm10, %v639_v51, %v637_v15  ;;  %v659_v28 = vmul.f32 %v658_v48, %v1686_v3 }
 0x171   :  { %v1747_v42 = vpop.eup %1197  ;;  %563 = vst.msk [vmem:[#allocation3 + $0x48] sm:$0xff] %vm28_vm0, %v547_v30  ;;  %v1751_v43 = vmax.f32 %v576_v40, 1e-12  ;;  %v804_v0 = vld [vmem:[#allocation3 + $0x38] sm:$0xff]  ;;  %v892_v21 = vmul.f32 0.5, %v891_v32  ;;  %v669_v40 = vsub.f32 1.5, %v668_v22 }
 0x172   :  { %486 = vst.msk [vmem:[#allocation2 + $0x60] sm:$0xff] %vm28_vm0, %v469_v14  ;;  %v858_v45 = vmul.f32 %v1192_v4, %v857_v39  ;;  %v866_v16 = vmul.f32 %v1747_v42, %v1732_v7  ;;  %v1787_v9 = vpop.eup %1199  ;;  %v1792_v23 = vmax.f32 %v804_v0, 1e-12  ;;  %v501_v5 = vld [vmem:[#allocation3 + $0x58] sm:$0xff]  ;;  %v885_v39 = vsel %vm884_vm13, %v1668_v49, %v883_v18  ;;  %v423_v0 = vld [vmem:[#allocation2 + $0x70] sm:$0xff] }
 0x173   :  { %1201 = vrsqrt.f32 %v1751_v43  ;;  %v902_v30 = vmul.f32 %v1787_v9, %v1740_v33  ;;  %v424_v35 = vld [vmem:[#allocation2 + $0x78] sm:$0xff]  ;;  %v1810_v41 = vmax.f32 %v581_v25, 1e-12  ;;  %v893_v51 = vsub.f32 1.5, %v892_v21 }
 0x174   :  { %v859_v20 = vmul.f32 %v858_v45, %v1705_v38  ;;  %v867_v53 = vmul.f32 %v1747_v42, %v866_v16  ;;  %1203 = vrsqrt.f32 %v1755_v44  ;;  %v670_v58 = vmul.f32 %v1738_v29, %v669_v40 }
 0x175   :  { %v535_v54 = vpop.xlane.xlu0 %534  ;;  %v531_v55 = vpop.xlane.xlu2 %530  ;;  %1205 = vrsqrt.f32 %v1776_v59  ;;  %v903_v52 = vmul.f32 %v1787_v9, %v902_v30  ;;  %vm648_vm4 = vcmp.eq.f32.partialorder %v1751_v43, inf  ;;  %vm650_vm5 = vcmp.eq.f32.partialorder %v1751_v43, 0.0 }
 0x176   :  { %v552_v60 = vmin.f32 %v504_v47, %v535_v54  ;;  %v550_v61 = vmin.f32 %v502_v50, %v531_v55  ;;  %v861_v62 = vsel %vm860_vm11, %v1705_v38, %v859_v20  ;;  %v868_v63 = vmul.f32 0.5, %v867_v53  ;;  %v533_v1 = vpop.xlane.xlu1 %532 }
 0x177   :  { %v864_v4 = vsel %vm862_vm12, %v863_v56, %v861_v62  ;;  %v551_v10 = vmin.f32 %v503_v24, %v533_v1  ;;  %1207 = vrsqrt.f32 %v1792_v23  ;;  %v661_v47 = vsel %vm660_vm15, %v1686_v3, %v659_v28 }
 0x178   :  { %568 = vst.msk [vmem:[#allocation3 + $0x70] sm:$0xff] %vm28_vm0, %v552_v60  ;;  %v1023_v11 = vsub.f32 %v640_v2, %v864_v4  ;;  %v869_v6 = vsub.f32 1.5, %v868_v63  ;;  %v887_v50 = vand.u32 2147483648, %v1668_v49  ;;  %v663_v54 = vand.u32 2147483648, %v1686_v3  ;;  %v805_v60 = vld [vmem:[#allocation3 + $0x40] sm:$0xff] }
 0x179   :  { %v1202_v17 = vpop.eup %1201  ;;  %566 = vst.msk [vmem:[#allocation3 + $0x60] sm:$0xff] %vm28_vm0, %v550_v61  ;;  %1209 = vrsqrt.f32 %v1810_v41  ;;  %v894_v49 = vmul.f32 %v1743_v36, %v893_v51  ;;  %v904_v3 = vmul.f32 0.5, %v903_v52  ;;  %v1845_v48 = vmax.f32 %v805_v60, 1e-12 }
 0x17a   :  { %567 = vst.msk [vmem:[#allocation3 + $0x68] sm:$0xff] %vm28_vm0, %v551_v10  ;;  %v1039_v12 = vadd.f32 0.3, %v1023_v11  ;;  %v642_v38 = vmul.f32 %v1202_v17, %v1751_v43  ;;  %v1798_v26 = vpop.eup %1203  ;;  %v870_v34 = vmul.f32 %v1747_v42, %v869_v6  ;;  %v1828_v56 = vsel %vm886_vm14, %v887_v50, %v885_v39 }
 0x17b   :  { %v678_v42 = vmul.f32 %v1798_v26, %v1755_v44  ;;  %v1817_v15 = vpop.eup %1205  ;;  %v1834_v62 = vsel %vm662_vm1, %v663_v54, %v661_v47  ;;  %v651_v10 = vand.u32 2147483648, %v1751_v43  ;;  %v875_v36 = vand.u32 2147483648, %v1732_v7  ;;  %v583_v47 = vld [vmem:[#allocation2 + $0x50] sm:$0xff] }
 0x17c   :  { %v1055_v31 = vmax.f32 %v1039_v12, 0.0  ;;  %v643_v8 = vmul.f32 %v1202_v17, %v642_v38  ;;  %v871_v24 = vmul.f32 %v870_v34, %v1732_v7  ;;  %v690_v29 = vmul.f32 %v1817_v15, %v1776_v59 }
 0x17d   :  { %v529_v14 = vpop.xlane.xlu0 %528  ;;  %v448_v37 = vpop.xlane.xlu2 %447  ;;  %v679_v63 = vmul.f32 %v1798_v26, %v678_v42  ;;  %v671_v11 = vmul.f32 %v670_v58, %v1718_v13  ;;  %v895_v25 = vmul.f32 %v894_v49, %v1724_v57  ;;  %1211 = vrsqrt.f32 %v1845_v48 }
 0x17e   :  { %v549_v19 = vmin.f32 %v501_v5, %v529_v14  ;;  %v468_v45 = vmax.f32 %v420_v27, %v448_v37  ;;  %1071 = vxpose.xlu0.b32.cont [3/16] (narrow) %v1055_v31, 8  ;;  %v644_v16 = vmul.f32 0.5, %v643_v8  ;;  %v456_v46 = vpop.xlane.xlu1 %455  ;;  %v1822_v55 = vpop.eup %1207  ;;  %v873_v2 = vsel %vm872_vm2, %v1732_v7, %v871_v24  ;;  %v505_v14 = vld [vmem:[#allocation3 + $0x78] sm:$0xff] }
 0x17f   :  { %v472_v20 = vmax.f32 %v424_v35, %v456_v46  ;;  %v914_v4 = vmul.f32 %v1822_v55, %v1792_v23  ;;  %v680_v18 = vmul.f32 0.5, %v679_v63  ;;  %v1853_v22 = vpop.eup %1209  ;;  %v876_v38 = vsel %vm874_vm3, %v875_v36, %v873_v2  ;;  %v807_v35 = vld [vmem:[#allocation3 + $0x50] sm:$0xff] }
 0x180   :  { %565 = vst.msk [vmem:[#allocation3 + $0x58] sm:$0xff] %vm28_vm0, %v549_v19  ;;  %v645_v53 = vsub.f32 1.5, %v644_v16  ;;  %v905_v27 = vsub.f32 1.5, %v904_v3  ;;  %v691_v28 = vmul.f32 %v1817_v15, %v690_v29  ;;  %v1025_v30 = vsub.f32 %v1834_v62, %v1828_v56 }
 0x181   :  { %485 = vst.msk [vmem:[#allocation2 + $0x58] sm:$0xff] %vm28_vm0, %v468_v45  ;;  %v915_v21 = vmul.f32 %v1822_v55, %v914_v4  ;;  %v675_v7 = vand.u32 2147483648, %v1718_v13  ;;  %v899_v8 = vand.u32 2147483648, %v1724_v57  ;;  %v681_v34 = vsub.f32 1.5, %v680_v18 }
 0x182   :  { %489 = vst.msk [vmem:[#allocation2 + $0x78] sm:$0xff] %vm28_vm0, %v472_v20  ;;  %v646_v61 = vmul.f32 %v1202_v17, %v645_v53  ;;  %v673_v37 = vsel %vm672_vm6, %v1718_v13, %v671_v11  ;;  %v897_v39 = vsel %vm896_vm7, %v1724_v57, %v895_v25  ;;  %v702_v40 = vmul.f32 %v1853_v22, %v1810_v41  ;;  %v806_v11 = vld [vmem:[#allocation3 + $0x48] sm:$0xff] }
 0x183   :  { %v906_v16 = vmul.f32 %v1787_v9, %v905_v27  ;;  %v692_v42 = vmul.f32 0.5, %v691_v28  ;;  %v916_v46 = vmul.f32 0.5, %v915_v21  ;;  %v1875_v50 = vpop.eup %1211  ;;  %vm898_vm9 = vcmp.eq.f32.partialorder %v1724_v57, 0.0 }
 0x184   :  { %v647_v1 = vmul.f32 %v646_v61, %v1751_v43  ;;  %v1879_v52 = vmax.f32 %v807_v35, 1e-12  ;;  %v676_v53 = vsel %vm674_vm8, %v675_v7, %v673_v37  ;;  %v900_v24 = vsel %vm898_vm9, %v899_v8, %v897_v39  ;;  %v809_v37 = vld [vmem:[#allocation3 + $0x60] sm:$0xff] }
 0x185   :  { %v454_v32 = vpop.xlane.xlu2 %453  ;;  %v682_v54 = vmul.f32 %v1798_v26, %v681_v34  ;;  %v703_v9 = vmul.f32 %v1853_v22, %v702_v40  ;;  %v926_v56 = vmul.f32 %v1875_v50, %v1845_v48  ;;  %v1886_v58 = vmax.f32 %v583_v47, 1e-12 }
 0x186   :  { %v471_v6 = vmax.f32 %v423_v0, %v454_v32  ;;  %v649_v17 = vsel %vm648_vm4, %v1751_v43, %v647_v1  ;;  %v582_v43 = vld [vmem:[#allocation2 + $0x48] sm:$0xff]  ;;  %v1041_v13 = vadd.f32 0.3, %v1025_v30  ;;  %v907_v57 = vmul.f32 %v906_v16, %v1740_v33 }
 0x187   :  { %v652_v12 = vsel %vm650_vm5, %v651_v10, %v649_v17  ;;  %v1872_v19 = vmax.f32 %v582_v43, 1e-12  ;;  %v693_v60 = vsub.f32 1.5, %v692_v42  ;;  %v917_v61 = vsub.f32 1.5, %v916_v46 }
 0x188   :  { %488 = vst.msk [vmem:[#allocation2 + $0x70] sm:$0xff] %vm28_vm0, %v471_v6  ;;  %v1024_v5 = vsub.f32 %v652_v12, %v876_v38  ;;  %v1026_v62 = vsub.f32 %v676_v53, %v900_v24  ;;  %v683_v26 = vmul.f32 %v682_v54, %v1755_v44  ;;  %vm908_vm10 = vcmp.eq.f32.partialorder %v1740_v33, inf }
 0x189   :  { %1213 = vrsqrt.f32 %v1872_v19  ;;  %v704_v63 = vmul.f32 0.5, %v703_v9  ;;  %v927_v0 = vmul.f32 %v1875_v50, %v926_v56  ;;  %v1057_v49 = vmax.f32 %v1041_v13, 0.0 }
 0x18a   :  { %v1040_v31 = vadd.f32 0.3, %v1024_v5  ;;  %1215 = vrsqrt.f32 %v1879_v52  ;;  %v909_v3 = vsel %vm908_vm10, %v1740_v33, %v907_v57  ;;  %v694_v29 = vmul.f32 %v1817_v15, %v693_v60 }
 0x18b   :  { %1217 = vrsqrt.f32 %v1886_v58  ;;  %v918_v1 = vmul.f32 %v1822_v55, %v917_v61  ;;  %v911_v4 = vand.u32 2147483648, %v1740_v33  ;;  %v1042_v32 = vadd.f32 0.3, %v1026_v62 }
 0x18c   :  { %v1056_v45 = vmax.f32 %v1040_v31, 0.0  ;;  %v687_v36 = vand.u32 2147483648, %v1755_v44  ;;  %vm910_vm11 = vcmp.eq.f32.partialorder %v1740_v33, 0.0  ;;  %v705_v17 = vsub.f32 1.5, %v704_v63 }
 0x18d   :  { %v537_v51 = vpop.xlane.xlu2 %536  ;;  %v912_v15 = vsel %vm910_vm11, %v911_v4, %v909_v3  ;;  %v928_v55 = vmul.f32 0.5, %v927_v0  ;;  %v1907_v18 = vmax.f32 %v806_v11, 1e-12  ;;  %vm686_vm12 = vcmp.eq.f32.partialorder %v1755_v44, 0.0  ;;  %v584_v3 = vld [vmem:[#allocation2 + $0x58] sm:$0xff] }
 0x18e   :  { %v553_v20 = vmin.f32 %v505_v14, %v537_v51  ;;  %1072 = vxpose.xlu0.b32.cont [4/16] (narrow) %v1056_v45, 8  ;;  %v695_v12 = vmul.f32 %v694_v29, %v1776_v59  ;;  %v919_v38 = vmul.f32 %v918_v1, %v1792_v23  ;;  %vm696_vm13 = vcmp.eq.f32.partialorder %v1776_v59, inf  ;;  %v808_v29 = vld [vmem:[#allocation3 + $0x58] sm:$0xff]  ;;  %v810_v1 = vld [vmem:[#allocation3 + $0x68] sm:$0xff] }
 0x18f   :  { %v1898_v2 = vpop.eup %1213  ;;  %1219 = vrsqrt.f32 %v1907_v18  ;;  %v1058_v21 = vmax.f32 %v1042_v32, 0.0  ;;  %vm920_vm14 = vcmp.eq.f32.partialorder %v1792_v23, inf  ;;  %v929_v43 = vsub.f32 1.5, %v928_v55 }
 0x190   :  { %569 = vst.msk [vmem:[#allocation3 + $0x78] sm:$0xff] %vm28_vm0, %v553_v20  ;;  %vm684_vm0 = vcmp.eq.f32.partialorder %v1755_v44, inf  ;;  %v1905_v6 = vpop.eup %1215  ;;  %v714_v25 = vmul.f32 %v1898_v2, %v1872_v19  ;;  %v697_v30 = vsel %vm696_vm13, %v1776_v59, %v695_v12  ;;  %v921_v7 = vsel %vm920_vm14, %v1792_v23, %v919_v38  ;;  %v585_v20 = vld [vmem:[#allocation2 + $0x60] sm:$0xff] }
 0x191   :  { %v685_v10 = vsel %vm684_vm0, %v1755_v44, %v683_v26  ;;  %v1914_v5 = vpop.eup %1217  ;;  %v950_v28 = vmul.f32 %v1905_v6, %v1879_v52  ;;  %v706_v44 = vmul.f32 %v1853_v22, %v705_v17  ;;  %v699_v34 = vand.u32 2147483648, %v1776_v59  ;;  %v586_v26 = vld [vmem:[#allocation2 + $0x68] sm:$0xff] }
 0x192   :  { %v688_v33 = vsel %vm686_vm12, %v687_v36, %v685_v10  ;;  %v715_v31 = vmul.f32 %v1898_v2, %v714_v25  ;;  %v726_v8 = vmul.f32 %v1914_v5, %v1886_v58  ;;  %v923_v35 = vand.u32 2147483648, %v1792_v23 }
 0x193   :  { %v1027_v27 = vsub.f32 %v688_v33, %v912_v15  ;;  %vm698_vm15 = vcmp.eq.f32.partialorder %v1776_v59, 0.0  ;;  %vm922_vm1 = vcmp.eq.f32.partialorder %v1792_v23, 0.0  ;;  %v951_v22 = vmul.f32 %v1905_v6, %v950_v28 }
 0x194   :  { %v700_v40 = vsel %vm698_vm15, %v699_v34, %v697_v30  ;;  %v924_v45 = vsel %vm922_vm1, %v923_v35, %v921_v7  ;;  %v707_v16 = vmul.f32 %v706_v44, %v1810_v41  ;;  %v930_v42 = vmul.f32 %v1875_v50, %v929_v43 }
 0x195   :  { %v1043_v14 = vadd.f32 0.3, %v1027_v27  ;;  %v1220_v39 = vpop.eup %1219  ;;  %v716_v46 = vmul.f32 0.5, %v715_v31  ;;  %v727_v51 = vmul.f32 %v1914_v5, %v726_v8  ;;  %v1936_v53 = vmax.f32 %v809_v37, 1e-12 }
 0x196   :  { %1073 = vxpose.xlu0.b32.cont [5/16] (narrow) %v1057_v49, 8  ;;  %v938_v47 = vmul.f32 %v1220_v39, %v1907_v18  ;;  %vm708_vm2 = vcmp.eq.f32.partialorder %v1810_v41, inf  ;;  %v711_v23 = vand.u32 2147483648, %v1810_v41  ;;  %v952_v54 = vmul.f32 0.5, %v951_v22 }
 0x197   :  { %v1059_v59 = vmax.f32 %v1043_v14, 0.0  ;;  %v1028_v9 = vsub.f32 %v700_v40, %v924_v45  ;;  %v709_v56 = vsel %vm708_vm2, %v1810_v41, %v707_v16  ;;  %v931_v50 = vmul.f32 %v930_v42, %v1845_v48  ;;  %v811_v40 = vld [vmem:[#allocation3 + $0x70] sm:$0xff] }
 0x198   :  { %v939_v24 = vmul.f32 %v1220_v39, %v938_v47  ;;  %v1942_v13 = vmax.f32 %v585_v20, 1e-12  ;;  %v717_v57 = vsub.f32 1.5, %v716_v46  ;;  %v728_v61 = vmul.f32 0.5, %v727_v51 }
 0x199   :  { %1221 = vrsqrt.f32 %v1936_v53  ;;  %vm710_vm3 = vcmp.eq.f32.partialorder %v1810_v41, 0.0  ;;  %vm932_vm4 = vcmp.eq.f32.partialorder %v1845_v48, inf  ;;  %v935_v62 = vand.u32 2147483648, %v1845_v48 }
 0x19a   :  { %v940_v60 = vmul.f32 0.5, %v939_v24  ;;  %v712_v63 = vsel %vm710_vm3, %v711_v23, %v709_v56  ;;  %v953_v49 = vsub.f32 1.5, %v952_v54  ;;  %v933_v4 = vsel %vm932_vm4, %v1845_v48, %v931_v50 }
 0x19b   :  { %v1949_v32 = vmax.f32 %v584_v3, 1e-12  ;;  %v1951_v10 = vmax.f32 %v808_v29, 1e-12  ;;  %1223 = vrsqrt.f32 %v1942_v13  ;;  %v1044_v41 = vadd.f32 0.3, %v1028_v9 }
 0x19c   :  { %v941_v0 = vsub.f32 1.5, %v940_v60  ;;  %v718_v36 = vmul.f32 %v1898_v2, %v717_v57  ;;  %v729_v15 = vsub.f32 1.5, %v728_v61  ;;  %vm934_vm5 = vcmp.eq.f32.partialorder %v1845_v48, 0.0 }
 0x19d   :  { %1225 = vrsqrt.f32 %v1949_v32  ;;  %v1957_v17 = vmax.f32 %v586_v26, 1e-12  ;;  %v1959_v55 = vmax.f32 %v810_v1, 1e-12  ;;  %v936_v38 = vsel %vm934_vm5, %v935_v62, %v933_v4 }
 0x19e   :  { %1074 = vxpose.xlu0.b32.cont [6/16] (narrow) %v1058_v21, 8  ;;  %v942_v11 = vmul.f32 %v1220_v39, %v941_v0  ;;  %v954_v33 = vmul.f32 %v1905_v6, %v953_v49  ;;  %1227 = vrsqrt.f32 %v1951_v10  ;;  %v1029_v2 = vsub.f32 %v712_v63, %v936_v38  ;;  %v812_v63 = vld [vmem:[#allocation3 + $0x78] sm:$0xff] }
 0x19f   :  { %v1961_v12 = vpop.eup %1221  ;;  %vm720_vm6 = vcmp.eq.f32.partialorder %v1872_v19, inf  ;;  %vm722_vm7 = vcmp.eq.f32.partialorder %v1872_v19, 0.0  ;;  %v1060_v48 = vmax.f32 %v1044_v41, 0.0  ;;  %v719_v27 = vmul.f32 %v718_v36, %v1872_v19  ;;  %v588_v36 = vld [vmem:[#allocation2 + $0x78] sm:$0xff] }
 0x1a0   :  { %v943_v25 = vmul.f32 %v942_v11, %v1907_v18  ;;  %v723_v28 = vand.u32 2147483648, %v1872_v19  ;;  %v730_v21 = vmul.f32 %v1914_v5, %v729_v15  ;;  %vm944_vm8 = vcmp.eq.f32.partialorder %v1907_v18, inf  ;;  %v587_v5 = vld [vmem:[#allocation2 + $0x70] sm:$0xff] }
 0x1a1   :  { %v1971_v44 = vpop.eup %1223  ;;  %vm732_vm9 = vcmp.eq.f32.partialorder %v1886_v58, inf  ;;  %v974_v6 = vmul.f32 %v1961_v12, %v1936_v53  ;;  %1229 = vrsqrt.f32 %v1959_v55  ;;  %v735_v30 = vand.u32 2147483648, %v1886_v58 }
 0x1a2   :  { %v945_v43 = vsel %vm944_vm8, %v1907_v18, %v943_v25  ;;  %v955_v7 = vmul.f32 %v954_v33, %v1879_v52  ;;  %1231 = vrsqrt.f32 %v1957_v17  ;;  %v1045_v8 = vadd.f32 0.3, %v1029_v2 }
 0x1a3   :  { %v1226_v31 = vpop.eup %1225  ;;  %vm946_vm10 = vcmp.eq.f32.partialorder %v1907_v18, 0.0  ;;  %v947_v34 = vand.u32 2147483648, %v1907_v18  ;;  %vm956_vm0 = vcmp.eq.f32.partialorder %v1879_v52, inf  ;;  %v721_v14 = vsel %vm720_vm6, %v1872_v19, %v719_v27 }
 0x1a4   :  { %v1228_v35 = vpop.eup %1227  ;;  %v731_v22 = vmul.f32 %v730_v21, %v1886_v58  ;;  %v738_v37 = vmul.f32 %v1226_v31, %v1949_v32  ;;  %v750_v39 = vmul.f32 %v1971_v44, %v1942_v13  ;;  %v975_v18 = vmul.f32 %v1961_v12, %v974_v6 }
 0x1a5   :  { %v948_v45 = vsel %vm946_vm10, %v947_v34, %v945_v43  ;;  %v962_v16 = vmul.f32 %v1228_v35, %v1951_v10  ;;  %v1994_v42 = vmax.f32 %v587_v5, 1e-12  ;;  %v957_v46 = vsel %vm956_vm0, %v1879_v52, %v955_v7 }
 0x1a6   :  { %1075 = vxpose.xlu0.b32.cont [7/16] (narrow) %v1059_v59, 8  ;;  %vm958_vm11 = vcmp.eq.f32.partialorder %v1879_v52, 0.0  ;;  %v959_v47 = vand.u32 2147483648, %v1879_v52  ;;  %v739_v51 = vmul.f32 %v1226_v31, %v738_v37  ;;  %v1061_v59 = vmax.f32 %v1045_v8, 0.0 }
 0x1a7   :  { %v1999_v20 = vpop.eup %1229  ;;  %v724_v23 = vsel %vm722_vm7, %v723_v28, %v721_v14  ;;  %v963_v24 = vmul.f32 %v1228_v35, %v962_v16  ;;  %v2003_v54 = vmax.f32 %v811_v40, 1e-12  ;;  %v733_v50 = vsel %vm732_vm9, %v1886_v58, %v731_v22 }
 0x1a8   :  { %v2005_v9 = vpop.eup %1231  ;;  %v1030_v56 = vsub.f32 %v724_v23, %v948_v45  ;;  %v740_v57 = vmul.f32 0.5, %v739_v51  ;;  %v751_v52 = vmul.f32 %v1971_v44, %v750_v39  ;;  %v960_v60 = vsel %vm958_vm11, %v959_v47, %v957_v46 }
 0x1a9   :  { %v964_v61 = vmul.f32 0.5, %v963_v24  ;;  %v976_v62 = vmul.f32 0.5, %v975_v18  ;;  %1233 = vrsqrt.f32 %v1994_v42  ;;  %vm734_vm12 = vcmp.eq.f32.partialorder %v1886_v58, 0.0 }
 0x1aa   :  { %v741_v19 = vsub.f32 1.5, %v740_v57  ;;  %v986_v26 = vmul.f32 %v1999_v20, %v1959_v55  ;;  %v736_v0 = vsel %vm734_vm12, %v735_v30, %v733_v50  ;;  %v762_v3 = vmul.f32 %v2005_v9, %v1957_v17 }
 0x1ab   :  { %v965_v49 = vsub.f32 1.5, %v964_v61  ;;  %1235 = vrsqrt.f32 %v2003_v54  ;;  %v1046_v29 = vadd.f32 0.3, %v1030_v56  ;;  %v1031_v1 = vsub.f32 %v736_v0, %v960_v60 }
 0x1ac   :  { %v742_v4 = vmul.f32 %v1226_v31, %v741_v19  ;;  %v752_v41 = vmul.f32 0.5, %v751_v52  ;;  %v977_v15 = vsub.f32 1.5, %v976_v62  ;;  %v2018_v58 = vmax.f32 %v812_v63, 1e-12 }
 0x1ad   :  { %v966_v11 = vmul.f32 %v1228_v35, %v965_v49  ;;  %v987_v25 = vmul.f32 %v1999_v20, %v986_v26  ;;  %v2026_v27 = vmax.f32 %v588_v36, 1e-12  ;;  %v1062_v28 = vmax.f32 %v1046_v29, 0.0 }
 0x1ae   :  { %1076 = vxpose.xlu0.b32.cont [8/16] (narrow) %v1060_v48, 8  ;;  %v743_v38 = vmul.f32 %v742_v4, %v1949_v32  ;;  %v763_v48 = vmul.f32 %v2005_v9, %v762_v3  ;;  %v1047_v21 = vadd.f32 0.3, %v1031_v1  ;;  %v753_v6 = vsub.f32 1.5, %v752_v41 }
 0x1af   :  { %v2022_v33 = vpop.eup %1233  ;;  %v967_v2 = vmul.f32 %v966_v11, %v1951_v10  ;;  %vm744_vm13 = vcmp.eq.f32.partialorder %v1949_v32, inf  ;;  %vm968_vm14 = vcmp.eq.f32.partialorder %v1951_v10, inf  ;;  %v978_v30 = vmul.f32 %v1961_v12, %v977_v15 }
 0x1b0   :  { %1237 = vrsqrt.f32 %v2018_v58  ;;  %v745_v7 = vsel %vm744_vm13, %v1949_v32, %v743_v38  ;;  %v988_v31 = vmul.f32 0.5, %v987_v25  ;;  %v774_v8 = vmul.f32 %v2022_v33, %v1994_v42 }
 0x1b1   :  { %v2028_v43 = vpop.eup %1235  ;;  %v969_v5 = vsel %vm968_vm14, %v1951_v10, %v967_v2  ;;  %v747_v34 = vand.u32 2147483648, %v1949_v32  ;;  %v971_v35 = vand.u32 2147483648, %v1951_v10  ;;  %v764_v14 = vmul.f32 0.5, %v763_v48 }
 0x1b2   :  { %1239 = vrsqrt.f32 %v2026_v27  ;;  %vm746_vm15 = vcmp.eq.f32.partialorder %v1949_v32, 0.0  ;;  %vm970_vm1 = vcmp.eq.f32.partialorder %v1951_v10, 0.0  ;;  %v754_v12 = vmul.f32 %v1971_v44, %v753_v6 }
 0x1b3   :  { %v998_v22 = vmul.f32 %v2028_v43, %v2003_v54  ;;  %v748_v37 = vsel %vm746_vm15, %v747_v34, %v745_v7  ;;  %v972_v39 = vsel %vm970_vm1, %v971_v35, %v969_v5  ;;  %v979_v40 = vmul.f32 %v978_v30, %v1936_v53 }
 0x1b4   :  { %v989_v45 = vsub.f32 1.5, %v988_v31  ;;  %v775_v16 = vmul.f32 %v2022_v33, %v774_v8  ;;  %v765_v46 = vsub.f32 1.5, %v764_v14  ;;  %v1063_v47 = vmax.f32 %v1047_v21, 0.0 }
 0x1b5   :  { %v1032_v51 = vsub.f32 %v748_v37, %v972_v39  ;;  %v755_v32 = vmul.f32 %v754_v12, %v1942_v13  ;;  %v999_v10 = vmul.f32 %v2028_v43, %v998_v22  ;;  %vm980_vm2 = vcmp.eq.f32.partialorder %v1936_v53, inf }
 0x1b6   :  { %1077 = vxpose.xlu0.b32.cont [9/16] (narrow) %v1061_v59, 8  ;;  %v1238_v18 = vpop.eup %1237  ;;  %v981_v44 = vsel %vm980_vm2, %v1936_v53, %v979_v40  ;;  %v990_v23 = vmul.f32 %v1999_v20, %v989_v45  ;;  %v776_v24 = vmul.f32 0.5, %v775_v16  ;;  %vm756_vm3 = vcmp.eq.f32.partialorder %v1942_v13, inf }
 0x1b7   :  { %v1010_v56 = vmul.f32 %v1238_v18, %v2018_v58  ;;  %vm982_vm4 = vcmp.eq.f32.partialorder %v1936_v53, 0.0  ;;  %v983_v50 = vand.u32 2147483648, %v1936_v53  ;;  %v766_v57 = vmul.f32 %v2005_v9, %v765_v46 }
 0x1b8   :  { %v1240_v59 = vpop.eup %1239  ;;  %v1048_v52 = vadd.f32 0.3, %v1032_v51  ;;  %v757_v60 = vsel %vm756_vm3, %v1942_v13, %v755_v32  ;;  %v1000_v61 = vmul.f32 0.5, %v999_v10  ;;  %v759_v19 = vand.u32 2147483648, %v1942_v13 }
 0x1b9   :  { %v786_v62 = vmul.f32 %v1240_v59, %v2026_v27  ;;  %v984_v20 = vsel %vm982_vm4, %v983_v50, %v981_v44  ;;  %vm758_vm5 = vcmp.eq.f32.partialorder %v1942_v13, 0.0  ;;  %v991_v26 = vmul.f32 %v990_v23, %v1959_v55 }
 0x1ba   :  { %v777_v63 = vsub.f32 1.5, %v776_v24  ;;  %v1011_v0 = vmul.f32 %v1238_v18, %v1010_v56  ;;  %v760_v49 = vsel %vm758_vm5, %v759_v19, %v757_v60  ;;  %v767_v53 = vmul.f32 %v766_v57, %v1957_v17 }
 0x1bb   :  { %v1064_v3 = vmax.f32 %v1048_v52, 0.0  ;;  %v1033_v9 = vsub.f32 %v760_v49, %v984_v20  ;;  %v1001_v29 = vsub.f32 1.5, %v1000_v61  ;;  %v787_v1 = vmul.f32 %v1240_v59, %v786_v62 }
 0x1bc   :  { %vm992_vm6 = vcmp.eq.f32.partialorder %v1959_v55, inf  ;;  %v778_v41 = vmul.f32 %v2022_v33, %v777_v63  ;;  %v1012_v36 = vmul.f32 0.5, %v1011_v0  ;;  %vm768_vm7 = vcmp.eq.f32.partialorder %v1957_v17, inf }
 0x1bd   :  { %v993_v4 = vsel %vm992_vm6, %v1959_v55, %v991_v26  ;;  %vm994_vm8 = vcmp.eq.f32.partialorder %v1959_v55, 0.0  ;;  %v995_v13 = vand.u32 2147483648, %v1959_v55  ;;  %v1049_v11 = vadd.f32 0.3, %v1033_v9 }
 0x1be   :  { %1078 = vxpose.xlu0.b32.cont [10/16] (narrow) %v1062_v28, 8  ;;  %v769_v15 = vsel %vm768_vm7, %v1957_v17, %v767_v53  ;;  %v1002_v38 = vmul.f32 %v2028_v43, %v1001_v29  ;;  %v788_v25 = vmul.f32 0.5, %v787_v1  ;;  %v771_v2 = vand.u32 2147483648, %v1957_v17 }
 0x1bf   :  { %v996_v48 = vsel %vm994_vm8, %v995_v13, %v993_v4  ;;  %vm770_vm9 = vcmp.eq.f32.partialorder %v1957_v17, 0.0  ;;  %v779_v33 = vmul.f32 %v778_v41, %v1994_v42  ;;  %v1013_v28 = vsub.f32 1.5, %v1012_v36 }
 0x1c0   :  { %v772_v21 = vsel %vm770_vm9, %v771_v2, %v769_v15  ;;  %v1065_v6 = vmax.f32 %v1049_v11, 0.0  ;;  %v1003_v7 = vmul.f32 %v1002_v38, %v2003_v54  ;;  %v789_v55 = vsub.f32 1.5, %v788_v25 }
 0x1c1   :  { %v1034_v30 = vsub.f32 %v772_v21, %v996_v48  ;;  %vm780_vm10 = vcmp.eq.f32.partialorder %v1994_v42, inf  ;;  %v1014_v5 = vmul.f32 %v1238_v18, %v1013_v28  ;;  %v783_v31 = vand.u32 2147483648, %v1994_v42 }
 0x1c2   :  { %v781_v43 = vsel %vm780_vm10, %v1994_v42, %v779_v33  ;;  %vm1004_vm0 = vcmp.eq.f32.partialorder %v2003_v54, inf  ;;  %vm782_vm11 = vcmp.eq.f32.partialorder %v1994_v42, 0.0  ;;  %v790_v34 = vmul.f32 %v1240_v59, %v789_v55 }
 0x1c3   :  { %v1050_v17 = vadd.f32 0.3, %v1034_v30  ;;  %v1005_v8 = vsel %vm1004_vm0, %v2003_v54, %v1003_v7  ;;  %v784_v35 = vsel %vm782_vm11, %v783_v31, %v781_v43  ;;  %v1007_v14 = vand.u32 2147483648, %v2003_v54 }
 0x1c4   :  { %vm1006_vm12 = vcmp.eq.f32.partialorder %v2003_v54, 0.0  ;;  %v1015_v12 = vmul.f32 %v1014_v5, %v2018_v58  ;;  %v791_v40 = vmul.f32 %v790_v34, %v2026_v27  ;;  %vm1016_vm13 = vcmp.eq.f32.partialorder %v2018_v58, inf }
 0x1c5   :  { %v1008_v22 = vsel %vm1006_vm12, %v1007_v14, %v1005_v8  ;;  %v1066_v37 = vmax.f32 %v1050_v17, 0.0  ;;  %vm792_vm14 = vcmp.eq.f32.partialorder %v2026_v27, inf  ;;  %v1019_v45 = vand.u32 2147483648, %v2018_v58 }
 0x1c6   :  { %1079 = vxpose.xlu0.b32.cont [11/16] (narrow) %v1063_v47, 8  ;;  %v1035_v39 = vsub.f32 %v784_v35, %v1008_v22  ;;  %v1017_v42 = vsel %vm1016_vm13, %v2018_v58, %v1015_v12  ;;  %v793_v18 = vsel %vm792_vm14, %v2026_v27, %v791_v40  ;;  %vm1018_vm15 = vcmp.eq.f32.partialorder %v2018_v58, 0.0 }
 0x1c7   :  { %v795_v54 = vand.u32 2147483648, %v2026_v27  ;;  %v1020_v46 = vsel %vm1018_vm15, %v1019_v45, %v1017_v42  ;;  %vm794_vm1 = vcmp.eq.f32.partialorder %v2026_v27, 0.0 }
 0x1c8   :  { %v1051_v16 = vadd.f32 0.3, %v1035_v39 }
 0x1c9   :  { %v796_v47 = vsel %vm794_vm1, %v795_v54, %v793_v18 }
 0x1ca   :  { %v1067_v51 = vmax.f32 %v1051_v16, 0.0  ;;  %v1036_v32 = vsub.f32 %v796_v47, %v1020_v46 }
 0x1cc   :  { %v1052_v10 = vadd.f32 0.3, %v1036_v32 }
 0x1ce   :  { %1080 = vxpose.xlu0.b32.cont [12/16] (narrow) %v1064_v3, 8  ;;  %v1068_v59 = vmax.f32 %v1052_v10, 0.0 }
 0x1d6   :  { %1081 = vxpose.xlu0.b32.cont [13/16] (narrow) %v1065_v6, 8 }
 0x1de   :  { %1082 = vxpose.xlu0.b32.cont [14/16] (narrow) %v1066_v37, 8 }
 0x1e6   :  { %1083 = vxpose.xlu0.b32.cont [15/16] (narrow) %v1067_v51, 8 }
 0x1ee   :  { %1084 = vxpose.xlu0.b32.end [16/16] (narrow) %v1068_v59, 8 }
 0x21a   :  { %v1085_v58 = vpop.trf.xlu0 }
 0x21b   :  { %1101 = vst [vmem:[#allocation4] sm:$0x1] %v1085_v58 }
 0x21c   :  { %1112 = dma.vmem_to_hbm [thread:$0]  %s1108_s5, 16, %s1110_s28, [#allocation5]  }
 0x21d   :  { %1265 = dma.done.wait [#allocation5], 16  }
 0x21e   :  { %1266 = vsyncadd [#allocation5], 4294967280 }
 0x21f   :  { %1117 = vsyncpa [#allocation5], 1 }

</bundles_post_ra>
